<compile_context>
chip_gen: v5e
topology: v5e:2x2
jax: 0.10.0
libtpu: 0.0.40
codegen_flags: <defaults>
</compile_context>

<pallas_src>
import functools

import jax
import jax.numpy as jnp
from jax.experimental import pallas as pl
from jax.experimental.pallas import tpu as pltpu


def _round_up(x, m):
    return (x + m - 1) // m * m


def _plan(n, tile_m, tile_k_max):
    """Node padding and reduction-tile size for a graph with n nodes."""
    n_pad = _round_up(n, tile_m)
    tile_k = 128
    for d in range(tile_k_max // 128, 0, -1):
        cand = 128 * d
        if n_pad % cand == 0:
            tile_k = cand
            break
    return n_pad, tile_k


def _vmem_limit(*buf_bytes):
    est = sum(buf_bytes) + (4 << 20)            # margin for internal scratch
    return int(min(128 << 20, max(32 << 20, est)))


def prepare_a_hat(a_hat, *, tile_m=256, tile_k_max=1024):
    """One-time bf16 cast + zero-pad of the normalized adjacency.

    A_hat is constant across layers and inference calls; preparing it once
    removes a full extra N^2 HBM write+read from every gcn_feedforward call.
    Zero padding is exact: padded source columns contribute nothing and padded
    destination rows are sliced off at the end.
    """
    n = a_hat.shape[0]
    n_pad, _ = _plan(n, tile_m, tile_k_max)
    a_p = jnp.zeros((n_pad, n_pad), jnp.bfloat16)
    return a_p.at[:n, :n].set(a_hat.astype(jnp.bfloat16))


# --------------------------------------------------------------------------
# Pass 1 (projected aggregation, hidden <= f_in after padding):
#   acc += A[i, k] @ (X W1)[k] ;  finalize: P[i] = relu(acc + b1) @ W2
# grid = (row_tiles, k_tiles); k is the reduction over source nodes.
# --------------------------------------------------------------------------
def _conv1_proj_kernel(a_ref, y_ref, b1_ref, w2_ref, p_ref, acc_ref, *, tile_k):
    k = pl.program_id(1)

    @pl.when(k == 0)
    def _():
        acc_ref[...] = jnp.zeros_like(acc_ref)

    start = pl.multiple_of(k * tile_k, tile_k)
    acc_ref[...] += jnp.dot(
        a_ref[...], y_ref[pl.ds(start, tile_k), :],
        preferred_element_type=jnp.float32)

    @pl.when(k == pl.num_programs(1) - 1)
    def _():
        h = jnp.maximum(acc_ref[...] + b1_ref[...], 0.0)       # bias + ReLU, f32
        # TODO(synk): training-mode dropout would apply a scaled Bernoulli mask
        # here via pltpu.prng_seed + pltpu.prng_random_bits; eval == identity.
        p = jnp.dot(h, w2_ref[...].astype(jnp.float32),
                    preferred_element_type=jnp.float32)
        p_ref[...] = p.astype(p_ref.dtype)


# --------------------------------------------------------------------------
# Pass 1 (raw aggregation, hidden > f_in after padding):
#   acc += A[i, k] @ X[k] ;  finalize: P[i] = relu(acc @ W1 + b1) @ W2
# --------------------------------------------------------------------------
def _conv1_raw_kernel(a_ref, x_ref, w1_ref, b1_ref, w2_ref, p_ref, acc_ref, *,
                      tile_k):
    k = pl.program_id(1)

    @pl.when(k == 0)
    def _():
        acc_ref[...] = jnp.zeros_like(acc_ref)

    start = pl.multiple_of(k * tile_k, tile_k)
    acc_ref[...] += jnp.dot(
        a_ref[...], x_ref[pl.ds(start, tile_k), :],
        preferred_element_type=jnp.float32)

    @pl.when(k == pl.num_programs(1) - 1)
    def _():
        h = jnp.dot(acc_ref[...], w1_ref[...].astype(jnp.float32),
                    preferred_element_type=jnp.float32) + b1_ref[...]
        h = jnp.maximum(h, 0.0)                                 # ReLU (VPU)
        p = jnp.dot(h, w2_ref[...].astype(jnp.float32),
                    preferred_element_type=jnp.float32)
        p_ref[...] = p.astype(p_ref.dtype)


# --------------------------------------------------------------------------
# Pass 2:  acc += A[i, k] @ P[k] ;  finalize: out[i] = acc + b2
# --------------------------------------------------------------------------
def _conv2_kernel(a_ref, p_ref, b2_ref, o_ref, acc_ref, *, tile_k):
    k = pl.program_id(1)

    @pl.when(k == 0)
    def _():
        acc_ref[...] = jnp.zeros_like(acc_ref)

    start = pl.multiple_of(k * tile_k, tile_k)
    acc_ref[...] += jnp.dot(
        a_ref[...], p_ref[pl.ds(start, tile_k), :],
        preferred_element_type=jnp.float32)

    @pl.when(k == pl.num_programs(1) - 1)
    def _():
        o_ref[...] = (acc_ref[...] + b2_ref[...]).astype(o_ref.dtype)


@functools.partial(jax.jit, static_argnames=("tile_m", "tile_k_max"))
def gcn_feedforward(a_prepared, x, w1, b1, w2, b2, *, tile_m=256,
                    tile_k_max=1024):
    """out = A_hat @ relu(A_hat @ X @ W1 + b1) @ W2 + b2  (eval-mode dropout).

    a_prepared: output of prepare_a_hat() with the SAME tile settings
                (bf16, zero-padded to (n_pad, n_pad)); constant per graph.
    tile_m:     node-row tile (256 works across v5e/v6e/v7x).
    tile_k_max: cap on the reduction tile (actual tile_k divides n_pad).
    """
    n, f_in = x.shape
    hidden = w1.shape[1]
    f_out = w2.shape[1]

    n_pad, tile_k = _plan(n, tile_m, tile_k_max)
    assert a_prepared.shape == (n_pad, n_pad), (
        "a_prepared must come from prepare_a_hat with the same tile settings")
    assert a_prepared.dtype == jnp.bfloat16

    fi_pad = _round_up(f_in, 128)
    h_pad = _round_up(hidden, 128)
    fo_pad = _round_up(f_out, 128)

    bf16, f32 = jnp.bfloat16, jnp.float32

    b1_p = jnp.zeros((1, h_pad), f32).at[:, :hidden].set(
        b1.reshape(1, -1).astype(f32))
    w2_p = jnp.zeros((h_pad, fo_pad), bf16).at[:hidden, :f_out].set(
        w2.astype(bf16))
    b2_p = jnp.zeros((1, fo_pad), f32).at[:, :f_out].set(
        b2.reshape(1, -1).astype(f32))

    grid = (n_pad // tile_m, n_pad // tile_k)
    a_spec = pl.BlockSpec((tile_m, tile_k), lambda i, k: (i, k))
    p_out_spec = pl.BlockSpec((tile_m, fo_pad), lambda i, k: (i, 0))

    use_proj = h_pad <= fi_pad
    if use_proj:
        # X @ W1 precomputed once in f32 (tiny: N x hidden); the kernel then
        # aggregates A @ (X W1) and only bias/ReLU/W2 sit in the epilogue.
        y = jnp.zeros((n_pad, h_pad), bf16).at[:n, :hidden].set(
            (x.astype(f32) @ w1.astype(f32)).astype(bf16))
        feat_dim = h_pad
        kernel1 = functools.partial(_conv1_proj_kernel, tile_k=tile_k)
        in_specs1 = [
            a_spec,                                               # A (streamed)
            pl.BlockSpec((n_pad, feat_dim), lambda i, k: (0, 0)), # X@W1 resident
            pl.BlockSpec((1, h_pad), lambda i, k: (0, 0)),        # b1
            pl.BlockSpec((h_pad, fo_pad), lambda i, k: (0, 0)),   # W2
        ]
        operands1 = (a_prepared, y, b1_p, w2_p)
    else:
        x_p = jnp.zeros((n_pad, fi_pad), bf16).at[:n, :f_in].set(x.astype(bf16))
        w1_p = jnp.zeros((fi_pad, h_pad), bf16).at[:f_in, :hidden].set(
            w1.astype(bf16))
        feat_dim = fi_pad
        kernel1 = functools.partial(_conv1_raw_kernel, tile_k=tile_k)
        in_specs1 = [
            a_spec,                                               # A (streamed)
            pl.BlockSpec((n_pad, feat_dim), lambda i, k: (0, 0)), # X resident
            pl.BlockSpec((fi_pad, h_pad), lambda i, k: (0, 0)),   # W1
            pl.BlockSpec((1, h_pad), lambda i, k: (0, 0)),        # b1
            pl.BlockSpec((h_pad, fo_pad), lambda i, k: (0, 0)),   # W2
        ]
        operands1 = (a_prepared, x_p, w1_p, b1_p, w2_p)

    vmem1 = _vmem_limit(
        2 * tile_m * tile_k * 2,        # A, double-buffered
        2 * n_pad * feat_dim * 2,       # resident feature stream
        2 * fi_pad * h_pad * 2,         # W1 (upper bound; absent in proj path)
        2 * h_pad * fo_pad * 2,         # W2
        2 * 8 * h_pad * 4,              # b1
        2 * tile_m * fo_pad * 2,        # P output block
        tile_m * feat_dim * 4,          # f32 accumulator scratch
    )

    # ---- pass 1: P = relu(A @ X @ W1 + b1) @ W2 (dropout == identity) ----
    p = pl.pallas_call(
        kernel1,
        out_shape=jax.ShapeDtypeStruct((n_pad, fo_pad), bf16),
        grid_spec=pltpu.PrefetchScalarGridSpec(
            num_scalar_prefetch=0,
            grid=grid,
            in_specs=in_specs1,
            out_specs=p_out_spec,
            scratch_shapes=[pltpu.VMEM((tile_m, feat_dim), jnp.float32)],
        ),
        compiler_params=pltpu.CompilerParams(
            dimension_semantics=("parallel", "arbitrary"),
            vmem_limit_bytes=vmem1),
    )(*operands1)

    vmem2 = _vmem_limit(
        2 * tile_m * tile_k * 2,        # A, double-buffered
        2 * n_pad * fo_pad * 2,         # resident P
        2 * 8 * fo_pad * 4,             # b2
        2 * tile_m * fo_pad * 4,        # f32 output block
        tile_m * fo_pad * 4,            # accumulator scratch
    )

    # ---- pass 2: out = (A @ P) + b2 ----
    out_p = pl.pallas_call(
        functools.partial(_conv2_kernel, tile_k=tile_k),
        out_shape=jax.ShapeDtypeStruct((n_pad, fo_pad), jnp.float32),
        grid_spec=pltpu.PrefetchScalarGridSpec(
            num_scalar_prefetch=0,
            grid=grid,
            in_specs=[
                a_spec,                                           # A (streamed)
                pl.BlockSpec((n_pad, fo_pad), lambda i, k: (0, 0)),  # P resident
                pl.BlockSpec((1, fo_pad), lambda i, k: (0, 0)),   # b2
            ],
            out_specs=p_out_spec,
            scratch_shapes=[pltpu.VMEM((tile_m, fo_pad), jnp.float32)],
        ),
        compiler_params=pltpu.CompilerParams(
            dimension_semantics=("parallel", "arbitrary"),
            vmem_limit_bytes=vmem2),
    )(a_prepared, p, b2_p)

    return out_p[:n, :f_out]


# --------------------------------------------------------------------------
# Reference
# --------------------------------------------------------------------------
def _reference_f32(a, x, w1, b1, w2, b2):
    h = jnp.maximum(a @ (x @ w1) + b1, 0.0)
    return a @ (h @ w2) + b2


if __name__ == "__main__":
    def build_problem(key, n, in_feats, hidden):
        k_adj, k_x, k_w1, k_b1, k_w2, k_b2 = jax.random.split(key, 6)
        # Random undirected graph with self-loops, symmetrically normalized.
        adj_rand = (jax.random.uniform(k_adj, (n, n)) < 0.25).astype(jnp.float32)
        adj = jnp.maximum(adj_rand, adj_rand.T)
        adj = jnp.maximum(adj, jnp.eye(n, dtype=jnp.float32))
        deg = jnp.sum(adj, axis=1)
        d_inv_sqrt = 1.0 / jnp.sqrt(deg)
        a_hat = adj * d_inv_sqrt[:, None] * d_inv_sqrt[None, :]
        x = jax.random.normal(k_x, (n, in_feats), dtype=jnp.float32)
        w1 = jax.random.normal(k_w1, (in_feats, hidden), dtype=jnp.float32) * 0.1
        b1 = jax.random.normal(k_b1, (1, hidden), dtype=jnp.float32) * 0.1
        w2 = jax.random.normal(k_w2, (hidden, in_feats), dtype=jnp.float32) * 0.1
        b2 = jax.random.normal(k_b2, (1, in_feats), dtype=jnp.float32) * 0.1
        return a_hat, x, w1, b1, w2, b2

    key = jax.random.PRNGKey(0)
    keys = jax.random.split(key, 3)

    # (key, N, in_feats, hidden, tile_m, tile_k_max)
    #  - case 1: toy shapes (single tile), projected-aggregation path
    #  - case 2: (2, 2) grid exercising the k-reduction accumulator path
    #  - case 3: hidden > in_feats -> raw-aggregation path (W1 in the epilogue)
    cases = [
        (keys[0], 16, 8, 32, 256, 1024),
        (keys[1], 512, 8, 32, 256, 256),
        (keys[2], 512, 8, 256, 256, 256),
    ]
    for k, n, f, h, tm, tkm in cases:
        a_hat, x, w1, b1, w2, b2 = build_problem(k, n, f, h)
        # A_hat is constant per graph: cast + pad exactly once, reuse per call.
        a_prep = prepare_a_hat(a_hat, tile_m=tm, tile_k_max=tkm)
        out = jax.block_until_ready(
            gcn_feedforward(a_prep, x, w1, b1, w2, b2, tile_m=tm, tile_k_max=tkm))
        assert out.shape == (n, f)

        ref = _reference_f32(a_hat, x, w1, b1, w2, b2)
        assert jnp.allclose(out, ref, atol=5e-2, rtol=5e-2), (
            f"mismatch vs f32 reference at N={n}, hidden={h}")

    print("KERNEL_OK")
</pallas_src>

<mosaic_0001>
module attributes {stable_mosaic.version = 11 : i64} {
  func.func @_conv2_kernel(%arg0: i32, %arg1: i32, %arg2: memref<256x256xbf16, #tpu.memory_space<vmem>>, %arg3: memref<256x128xbf16, #tpu.memory_space<vmem>>, %arg4: memref<1x128xf32, #tpu.memory_space<vmem>>, %arg5: memref<256x128xf32, #tpu.memory_space<vmem>>, %arg6: memref<256x128xf32, #tpu.memory_space<vmem>>) attributes {dimension_semantics = [#tpu.dimension_semantics<parallel>, #tpu.dimension_semantics<arbitrary>], iteration_bounds = array<i64: 1, 1>, scalar_prefetch = 0 : i64, scratch_operands = 1 : i64, tpu.core_type = #tpu.core_type<tc>, window_params = [{transform_indices = @transform_0, window_bounds = array<i64: 256, 256>}, {pipeline_mode = #tpu.pipeline_mode<synchronous>, transform_indices = @transform_1, window_bounds = array<i64: 256, 128>}, {pipeline_mode = #tpu.pipeline_mode<synchronous>, transform_indices = @transform_2, window_bounds = array<i64: 1, 128>}, {transform_indices = @transform_3, window_bounds = array<i64: 256, 128>}]} {
    %c0_i32 = arith.constant 0 : i32
    %0 = arith.cmpi eq, %arg1, %c0_i32 : i32
    %1 = arith.extui %0 : i1 to i32
    %c0_i32_0 = arith.constant 0 : i32
    %2 = arith.cmpi ne, %1, %c0_i32_0 : i32
    scf.if %2 {
      %cst_9 = arith.constant 0.000000e+00 : f32
      %15 = vector.broadcast %cst_9 : f32 to vector<256x128xf32>
      %c0_10 = arith.constant 0 : index
      %c0_11 = arith.constant 0 : index
      %16 = vector.load %arg6[%c0_10, %c0_11] : memref<256x128xf32, #tpu.memory_space<vmem>>, vector<256x128xf32>
      tpu.vector_store %arg6[%c0_10, %c0_11], %15 {strides = array<i32>} : memref<256x128xf32, #tpu.memory_space<vmem>>, vector<256x128xf32>,
    } else {
    }
    %c256_i32 = arith.constant 256 : i32
    %3 = arith.muli %arg1, %c256_i32 : i32
    %4 = tpu.assume_multiple %3, 256 : i32
    %c0 = arith.constant 0 : index
    %c0_1 = arith.constant 0 : index
    %5 = vector.load %arg6[%c0, %c0_1] : memref<256x128xf32, #tpu.memory_space<vmem>>, vector<256x128xf32>
    %c0_2 = arith.constant 0 : index
    %c0_3 = arith.constant 0 : index
    %6 = vector.load %arg2[%c0_2, %c0_3] : memref<256x256xbf16, #tpu.memory_space<vmem>>, vector<256x256xbf16>
    %7 = arith.index_cast %4 : i32 to index
    %c0_4 = arith.constant 0 : index
    %8 = vector.load %arg3[%7, %c0_4] : memref<256x128xbf16, #tpu.memory_space<vmem>>, vector<256x128xbf16>
    %cst = arith.constant dense<0.000000e+00> : vector<256x128xf32>
    %9 = tpu.matmul %6, %8, %cst {dimension_numbers = #tpu.dot_dimension_numbers<[1], [0], [0], [1], [0, 0, 1, 1], [], []>} : vector<256x256xbf16>, vector<256x128xbf16>, vector<256x128xf32> -> vector<256x128xf32>
    %10 = arith.addf %5, %9 : vector<256x128xf32>
    %c0_5 = arith.constant 0 : index
    %c0_6 = arith.constant 0 : index
    %11 = vector.load %arg6[%c0_5, %c0_6] : memref<256x128xf32, #tpu.memory_space<vmem>>, vector<256x128xf32>
    tpu.vector_store %arg6[%c0_5, %c0_6], %10 {strides = array<i32>} : memref<256x128xf32, #tpu.memory_space<vmem>>, vector<256x128xf32>,
    %c0_i32_7 = arith.constant 0 : i32
    %12 = arith.cmpi eq, %arg1, %c0_i32_7 : i32
    %13 = arith.extui %12 : i1 to i32
    %c0_i32_8 = arith.constant 0 : i32
    %14 = arith.cmpi ne, %13, %c0_i32_8 : i32
    scf.if %14 {
      %c0_9 = arith.constant 0 : index
      %c0_10 = arith.constant 0 : index
      %15 = vector.load %arg6[%c0_9, %c0_10] : memref<256x128xf32, #tpu.memory_space<vmem>>, vector<256x128xf32>
      %c0_11 = arith.constant 0 : index
      %c0_12 = arith.constant 0 : index
      %16 = vector.load %arg4[%c0_11, %c0_12] : memref<1x128xf32, #tpu.memory_space<vmem>>, vector<1x128xf32>
      %17 = vector.broadcast %16 : vector<1x128xf32> to vector<256x128xf32>
      %18 = arith.addf %15, %17 : vector<256x128xf32>
      %c0_13 = arith.constant 0 : index
      %c0_14 = arith.constant 0 : index
      %19 = vector.load %arg5[%c0_13, %c0_14] : memref<256x128xf32, #tpu.memory_space<vmem>>, vector<256x128xf32>
      tpu.vector_store %arg5[%c0_13, %c0_14], %18 {strides = array<i32>} : memref<256x128xf32, #tpu.memory_space<vmem>>, vector<256x128xf32>,
    } else {
    }
    return
  }
  func.func @transform_0(%arg0: i32, %arg1: i32) -> (i32, i32) {
    %c0_i32 = arith.constant 0 : i32
    return %arg0, %arg1 : i32, i32
  }
  func.func @transform_1(%arg0: i32, %arg1: i32) -> (i32, i32) {
    %c0_i32 = arith.constant 0 : i32
    %c0_i32_0 = arith.constant 0 : i32
    %c0_i32_1 = arith.constant 0 : i32
    return %c0_i32, %c0_i32_0 : i32, i32
  }
  func.func @transform_2(%arg0: i32, %arg1: i32) -> (i32, i32) {
    %c0_i32 = arith.constant 0 : i32
    %c0_i32_0 = arith.constant 0 : i32
    %c0_i32_1 = arith.constant 0 : i32
    return %c0_i32, %c0_i32_0 : i32, i32
  }
  func.func @transform_3(%arg0: i32, %arg1: i32) -> (i32, i32) {
    %c0_i32 = arith.constant 0 : i32
    %c0_i32_0 = arith.constant 0 : i32
    return %arg0, %c0_i32 : i32, i32
  }
}

module attributes {stable_mosaic.version = 11 : i64} {
  func.func @_conv1_proj_kernel(%arg0: i32, %arg1: i32, %arg2: memref<256x256xbf16, #tpu.memory_space<vmem>>, %arg3: memref<256x128xbf16, #tpu.memory_space<vmem>>, %arg4: memref<1x128xf32, #tpu.memory_space<vmem>>, %arg5: memref<128x128xbf16, #tpu.memory_space<vmem>>, %arg6: memref<256x128xbf16, #tpu.memory_space<vmem>>, %arg7: memref<256x128xf32, #tpu.memory_space<vmem>>) attributes {dimension_semantics = [#tpu.dimension_semantics<parallel>, #tpu.dimension_semantics<arbitrary>], iteration_bounds = array<i64: 1, 1>, scalar_prefetch = 0 : i64, scratch_operands = 1 : i64, tpu.core_type = #tpu.core_type<tc>, window_params = [{transform_indices = @transform_0, window_bounds = array<i64: 256, 256>}, {pipeline_mode = #tpu.pipeline_mode<synchronous>, transform_indices = @transform_1, window_bounds = array<i64: 256, 128>}, {pipeline_mode = #tpu.pipeline_mode<synchronous>, transform_indices = @transform_2, window_bounds = array<i64: 1, 128>}, {pipeline_mode = #tpu.pipeline_mode<synchronous>, transform_indices = @transform_3, window_bounds = array<i64: 128, 128>}, {transform_indices = @transform_4, window_bounds = array<i64: 256, 128>}]} {
    %c0_i32 = arith.constant 0 : i32
    %0 = arith.cmpi eq, %arg1, %c0_i32 : i32
    %1 = arith.extui %0 : i1 to i32
    %c0_i32_0 = arith.constant 0 : i32
    %2 = arith.cmpi ne, %1, %c0_i32_0 : i32
    scf.if %2 {
      %cst_9 = arith.constant 0.000000e+00 : f32
      %15 = vector.broadcast %cst_9 : f32 to vector<256x128xf32>
      %c0_10 = arith.constant 0 : index
      %c0_11 = arith.constant 0 : index
      %16 = vector.load %arg7[%c0_10, %c0_11] : memref<256x128xf32, #tpu.memory_space<vmem>>, vector<256x128xf32>
      tpu.vector_store %arg7[%c0_10, %c0_11], %15 {strides = array<i32>} : memref<256x128xf32, #tpu.memory_space<vmem>>, vector<256x128xf32>,
    } else {
    }
    %c256_i32 = arith.constant 256 : i32
    %3 = arith.muli %arg1, %c256_i32 : i32
    %4 = tpu.assume_multiple %3, 256 : i32
    %c0 = arith.constant 0 : index
    %c0_1 = arith.constant 0 : index
    %5 = vector.load %arg7[%c0, %c0_1] : memref<256x128xf32, #tpu.memory_space<vmem>>, vector<256x128xf32>
    %c0_2 = arith.constant 0 : index
    %c0_3 = arith.constant 0 : index
    %6 = vector.load %arg2[%c0_2, %c0_3] : memref<256x256xbf16, #tpu.memory_space<vmem>>, vector<256x256xbf16>
    %7 = arith.index_cast %4 : i32 to index
    %c0_4 = arith.constant 0 : index
    %8 = vector.load %arg3[%7, %c0_4] : memref<256x128xbf16, #tpu.memory_space<vmem>>, vector<256x128xbf16>
    %cst = arith.constant dense<0.000000e+00> : vector<256x128xf32>
    %9 = tpu.matmul %6, %8, %cst {dimension_numbers = #tpu.dot_dimension_numbers<[1], [0], [0], [1], [0, 0, 1, 1], [], []>} : vector<256x256xbf16>, vector<256x128xbf16>, vector<256x128xf32> -> vector<256x128xf32>
    %10 = arith.addf %5, %9 : vector<256x128xf32>
    %c0_5 = arith.constant 0 : index
    %c0_6 = arith.constant 0 : index
    %11 = vector.load %arg7[%c0_5, %c0_6] : memref<256x128xf32, #tpu.memory_space<vmem>>, vector<256x128xf32>
    tpu.vector_store %arg7[%c0_5, %c0_6], %10 {strides = array<i32>} : memref<256x128xf32, #tpu.memory_space<vmem>>, vector<256x128xf32>,
    %c0_i32_7 = arith.constant 0 : i32
    %12 = arith.cmpi eq, %arg1, %c0_i32_7 : i32
    %13 = arith.extui %12 : i1 to i32
    %c0_i32_8 = arith.constant 0 : i32
    %14 = arith.cmpi ne, %13, %c0_i32_8 : i32
    scf.if %14 {
      %c0_9 = arith.constant 0 : index
      %c0_10 = arith.constant 0 : index
      %15 = vector.load %arg7[%c0_9, %c0_10] : memref<256x128xf32, #tpu.memory_space<vmem>>, vector<256x128xf32>
      %c0_11 = arith.constant 0 : index
      %c0_12 = arith.constant 0 : index
      %16 = vector.load %arg4[%c0_11, %c0_12] : memref<1x128xf32, #tpu.memory_space<vmem>>, vector<1x128xf32>
      %17 = vector.broadcast %16 : vector<1x128xf32> to vector<256x128xf32>
      %18 = arith.addf %15, %17 : vector<256x128xf32>
      %cst_13 = arith.constant 0.000000e+00 : f32
      %19 = vector.broadcast %cst_13 : f32 to vector<256x128xf32>
      %20 = arith.maximumf %18, %19 : vector<256x128xf32>
      %c0_14 = arith.constant 0 : index
      %c0_15 = arith.constant 0 : index
      %21 = vector.load %arg5[%c0_14, %c0_15] : memref<128x128xbf16, #tpu.memory_space<vmem>>, vector<128x128xbf16>
      %22 = arith.extf %21 : vector<128x128xbf16> to vector<128x128xf32>
      %cst_16 = arith.constant dense<0.000000e+00> : vector<256x128xf32>
      %23 = tpu.matmul %20, %22, %cst_16 {dimension_numbers = #tpu.dot_dimension_numbers<[1], [0], [0], [1], [0, 0, 1, 1], [], []>} : vector<256x128xf32>, vector<128x128xf32>, vector<256x128xf32> -> vector<256x128xf32>
      %24 = arith.truncf %23 : vector<256x128xf32> to vector<256x128xbf16>
      %c0_17 = arith.constant 0 : index
      %c0_18 = arith.constant 0 : index
      %25 = vector.load %arg6[%c0_17, %c0_18] : memref<256x128xbf16, #tpu.memory_space<vmem>>, vector<256x128xbf16>
      tpu.vector_store %arg6[%c0_17, %c0_18], %24 {strides = array<i32>} : memref<256x128xbf16, #tpu.memory_space<vmem>>, vector<256x128xbf16>,
    } else {
    }
    return
  }
  func.func @transform_0(%arg0: i32, %arg1: i32) -> (i32, i32) {
    %c0_i32 = arith.constant 0 : i32
    return %arg0, %arg1 : i32, i32
  }
  func.func @transform_1(%arg0: i32, %arg1: i32) -> (i32, i32) {
    %c0_i32 = arith.constant 0 : i32
    %c0_i32_0 = arith.constant 0 : i32
    %c0_i32_1 = arith.constant 0 : i32
    return %c0_i32, %c0_i32_0 : i32, i32
  }
  func.func @transform_2(%arg0: i32, %arg1: i32) -> (i32, i32) {
    %c0_i32 = arith.constant 0 : i32
    %c0_i32_0 = arith.constant 0 : i32
    %c0_i32_1 = arith.constant 0 : i32
    return %c0_i32, %c0_i32_0 : i32, i32
  }
  func.func @transform_3(%arg0: i32, %arg1: i32) -> (i32, i32) {
    %c0_i32 = arith.constant 0 : i32
    %c0_i32_0 = arith.constant 0 : i32
    %c0_i32_1 = arith.constant 0 : i32
    return %c0_i32, %c0_i32_0 : i32, i32
  }
  func.func @transform_4(%arg0: i32, %arg1: i32) -> (i32, i32) {
    %c0_i32 = arith.constant 0 : i32
    %c0_i32_0 = arith.constant 0 : i32
    return %arg0, %c0_i32 : i32, i32
  }
}

</mosaic_0001>

<bundles_post_ra>
// kernel: gcn_feedforward.2
= control target key start
LH: loop header
LB: loop body
LE: loop exit
PB: predicated region body
PF: predicated region fallthrough
CT: control target
= control target key end

     0   :  { %s1775_s1 = inlined_call_operand.vmem [shape: bf16[256,128], index: 1, kind: input, shape index: {}]   ;;  %s1776_s0 = inlined_call_operand.vmem [shape: bf16[256,256], index: 0, kind: input, shape index: {}]   ;;  %s1777_s2 = inlined_call_operand.vmem [shape: f32[1,128], index: 2, kind: input, shape index: {}]   ;;  %s1778_s3 = inlined_call_operand.vmem [shape: bf16[128,128], index: 3, kind: input, shape index: {}]   ;;  %s1779_s4 = inlined_call_operand.vmem [shape: bf16[256,128], index: 4, kind: output, shape index: {}]  }
   0x1   :  { %v1201_v0 = vld [vmem:[%s1775_s1 + $0x38] sm:$0xff]  ;;  %v1200_v2 = vld [vmem:[%s1775_s1 + $0x30] sm:$0xff]  ;;  %v1199_v4 = vld [vmem:[%s1775_s1 + $0x28] sm:$0xff] }
   0x2   :  { %v1209_v1 = vld [vmem:[%s1775_s1 + $0x78] sm:$0xff]  ;;  %410 = vmatpush.bf16.msra.mxu0 %v1201_v0  ;;  %1344 = vmatpush.bf16.msra.mxu3 %v1201_v0  ;;  %v1208_v3 = vld [vmem:[%s1775_s1 + $0x70] sm:$0xff]  ;;  %v1207_v5 = vld [vmem:[%s1775_s1 + $0x68] sm:$0xff] }
   0x3   :  { %499 = vmatpush.bf16.msra.mxu1 %v1209_v1  ;;  %v1198_v6 = vld [vmem:[%s1775_s1 + $0x20] sm:$0xff]  ;;  %v1197_v8 = vld [vmem:[%s1775_s1 + $0x18] sm:$0xff]  ;;  %v1196_v10 = vld [vmem:[%s1775_s1 + $0x10] sm:$0xff] }
   0x4   :  { %v1206_v7 = vld [vmem:[%s1775_s1 + $0x60] sm:$0xff]  ;;  %v1205_v9 = vld [vmem:[%s1775_s1 + $0x58] sm:$0xff]  ;;  %v1204_v11 = vld [vmem:[%s1775_s1 + $0x50] sm:$0xff] }
   0x5   :  { %v1195_v12 = vld [vmem:[%s1775_s1 + $0x8] sm:$0xff]  ;;  %v1194_v14 = vld [vmem:[%s1775_s1] sm:$0xff]  ;;  %v980_v25 = vld [vmem:[%s1776_s0 + $0x10] sm:$0xf] }
   0x6   :  { %411 = vmatpush.bf16.msra.mxu0 %v1200_v2  ;;  %1345 = vmatpush.bf16.msra.mxu3 %v1200_v2  ;;  %v1203_v13 = vld [vmem:[%s1775_s1 + $0x48] sm:$0xff]  ;;  %v972_v15 = vld [vmem:[%s1776_s0] sm:$0xf]  ;;  %v1162_v20 = vld [vmem:[%s1776_s0 + $0x4] sm:$0xf] }
   0x7   :  { %500 = vmatpush.bf16.msra.mxu1 %v1208_v3  ;;  %v1163_v16 = vld [vmem:[%s1776_s0 + $0x4] sm:$0xf0]  ;;  %v1068_v17 = vld [vmem:[%s1776_s0 + $0xc0] sm:$0xf]  ;;  %v974_v21 = vld [vmem:[%s1776_s0 + $0x8] sm:$0xf0] }
   0x8   :  { %v1187_v18 = vld [vmem:[%s1776_s0 + $0xc4] sm:$0xf0]  ;;  %v1202_v19 = vld [vmem:[%s1775_s1 + $0x40] sm:$0xff]  ;;  %v973_v22 = vor.u32 %v1163_v16, %v972_v15  ;;  %v977_v24 = vor.u32 %v1162_v20, %v974_v21  ;;  %v1165_v26 = vld [vmem:[%s1776_s0 + $0x14] sm:$0xf0] }
   0x9   :  { %v1069_v23 = vor.u32 %v1187_v18, %v1068_v17  ;;  %v1076_v27 = vld [vmem:[%s1776_s0 + $0xd0] sm:$0xf]  ;;  %v1189_v28 = vld [vmem:[%s1776_s0 + $0xd4] sm:$0xf0]  ;;  %v1164_v29 = vld [vmem:[%s1776_s0 + $0x14] sm:$0xf]  ;;  %v981_v31 = vor.u32 %v1165_v26, %v980_v25 }
   0xa   :  { %412 = vmatpush.bf16.msra.mxu0 %v1199_v4  ;;  %1346 = vmatpush.bf16.msra.mxu3 %v1199_v4  ;;  %v982_v30 = vld [vmem:[%s1776_s0 + $0x18] sm:$0xf0]  ;;  %v1077_v32 = vor.u32 %v1189_v28, %v1076_v27  ;;  %v988_v34 = vld [vmem:[%s1776_s0 + $0x20] sm:$0xf]  ;;  %v1167_v35 = vld [vmem:[%s1776_s0 + $0x24] sm:$0xf0] }
   0xb   :  { %501 = vmatpush.bf16.msra.mxu1 %v1207_v5  ;;  %v985_v33 = vor.u32 %v1164_v29, %v982_v30  ;;  %v1084_v36 = vld [vmem:[%s1776_s0 + $0xe0] sm:$0xf]  ;;  %v1191_v37 = vld [vmem:[%s1776_s0 + $0xe4] sm:$0xf0]  ;;  %v1166_v38 = vld [vmem:[%s1776_s0 + $0x24] sm:$0xf]  ;;  %v989_v40 = vor.u32 %v1167_v35, %v988_v34 }
   0xc   :  { %v990_v39 = vld [vmem:[%s1776_s0 + $0x28] sm:$0xf0]  ;;  %v1085_v41 = vor.u32 %v1191_v37, %v1084_v36  ;;  %v996_v43 = vld [vmem:[%s1776_s0 + $0x30] sm:$0xf]  ;;  %v1169_v44 = vld [vmem:[%s1776_s0 + $0x34] sm:$0xf0] }
   0xd   :  { %v993_v42 = vor.u32 %v1166_v38, %v990_v39  ;;  %v1092_v45 = vld [vmem:[%s1776_s0 + $0xf0] sm:$0xf]  ;;  %v1193_v46 = vld [vmem:[%s1776_s0 + $0xf4] sm:$0xf0]  ;;  %v1168_v47 = vld [vmem:[%s1776_s0 + $0x34] sm:$0xf]  ;;  %v997_v49 = vor.u32 %v1169_v44, %v996_v43 }
   0xe   :  { %413 = vmatpush.bf16.msra.mxu0 %v1198_v6  ;;  %1347 = vmatpush.bf16.msra.mxu3 %v1198_v6  ;;  %v998_v48 = vld [vmem:[%s1776_s0 + $0x38] sm:$0xf0]  ;;  %v1093_v50 = vor.u32 %v1193_v46, %v1092_v45  ;;  %v1004_v52 = vld [vmem:[%s1776_s0 + $0x40] sm:$0xf]  ;;  %v1171_v53 = vld [vmem:[%s1776_s0 + $0x44] sm:$0xf0] }
   0xf   :  { %502 = vmatpush.bf16.msra.mxu1 %v1206_v7  ;;  %v1001_v51 = vor.u32 %v1168_v47, %v998_v48  ;;  %v1186_v54 = vld [vmem:[%s1776_s0 + $0xc4] sm:$0xf]  ;;  %v1070_v55 = vld [vmem:[%s1776_s0 + $0xc8] sm:$0xf0]  ;;  %v1005_v58 = vor.u32 %v1171_v53, %v1004_v52  ;;  %v1328_v61 = vld [vmem:[%s1778_s3 + $0x38] sm:$0xff]  }
  0x10   :  { %v1170_v56 = vld [vmem:[%s1776_s0 + $0x44] sm:$0xf]  ;;  %v1006_v57 = vld [vmem:[%s1776_s0 + $0x48] sm:$0xf0]  ;;  %v1073_v59 = vor.u32 %v1186_v54, %v1070_v55  ;;  %v1327_v62 = vld [vmem:[%s1778_s3 + $0x30] sm:$0xff]   ;;  %v1241_v63 = vunpack.c.h.bf16 %v1328_v61  ;;  %v1240_v0 = vunpack.c.l.bf16 %v1328_v61 }
  0x11   :  { %v1009_v60 = vor.u32 %v1170_v56, %v1006_v57  ;;  %v1326_v2 = vld [vmem:[%s1778_s3 + $0x28] sm:$0xff]   ;;  %v1012_v4 = vld [vmem:[%s1776_s0 + $0x50] sm:$0xf]  ;;  %v1173_v6 = vld [vmem:[%s1776_s0 + $0x54] sm:$0xf0] }
  0x12   :  { %414 = vmatpush.bf16.msra.mxu0 %v1197_v8  ;;  %1348 = vmatpush.bf16.msra.mxu3 %v1197_v8  ;;  %v1078_v8 = vld [vmem:[%s1776_s0 + $0xd8] sm:$0xf0]  ;;  %v1325_v15 = vld [vmem:[%s1778_s3 + $0x20] sm:$0xff]   ;;  %v1323_v20 = vld [vmem:[%s1778_s3 + $0x10] sm:$0xff]  }
  0x13   :  { %503 = vmatpush.bf16.msra.mxu1 %v1205_v9  ;;  %787 = vmatpush.msra.mxu2 %v1241_v63  ;;  %v1229_v16 = vunpack.c.h.bf16 %v1325_v15  ;;  %v1228_v17 = vunpack.c.l.bf16 %v1325_v15  ;;  %v1324_v18 = vld [vmem:[%s1778_s3 + $0x18] sm:$0xff]   ;;  %v1175_v25 = vld [vmem:[%s1776_s0 + $0x64] sm:$0xf0]  ;;  %v1190_v26 = vld [vmem:[%s1776_s0 + $0xe4] sm:$0xf] }
  0x14   :  { %v1224_v21 = vunpack.c.l.bf16 %v1324_v18  ;;  %v1086_v27 = vld [vmem:[%s1776_s0 + $0xe8] sm:$0xf0]  ;;  %v1174_v28 = vld [vmem:[%s1776_s0 + $0x64] sm:$0xf]  ;;  %v1028_v39 = vld [vmem:[%s1776_s0 + $0x70] sm:$0xf] }
  0x15   :  { %788 = vmatpush.msra.mxu2 %v1240_v0  ;;  %v1022_v29 = vld [vmem:[%s1776_s0 + $0x68] sm:$0xf0]  ;;  %v1211_v36 = vld [vmem:[%s1778_s3] sm:$0xff]   ;;  %v1176_v43 = vld [vmem:[%s1776_s0 + $0x74] sm:$0xf] }
  0x16   :  { %415 = vmatpush.bf16.msra.mxu0 %v1196_v10  ;;  %1349 = vmatpush.bf16.msra.mxu3 %v1196_v10  ;;  %v1014_v10 = vld [vmem:[%s1776_s0 + $0x58] sm:$0xf0]  ;;  %v1322_v30 = vld [vmem:[%s1778_s3 + $0x8] sm:$0xff]   ;;  %v1025_v34 = vor.u32 %v1174_v28, %v1022_v29  ;;  %v1213_v37 = vunpack.c.h.bf16 %v1211_v36  ;;  %v1212_v38 = vunpack.c.l.bf16 %v1211_v36  ;;  %v1036_v48 = vld [vmem:[%s1776_s0 + $0x80] sm:$0xf] }
  0x17   :  { %504 = vmatpush.bf16.msra.mxu1 %v1204_v11  ;;  %v1216_v35 = vunpack.c.l.bf16 %v1322_v30  ;;  %v1030_v44 = vld [vmem:[%s1776_s0 + $0x78] sm:$0xf0]  ;;  %v1633_v55 = vld [vmem:[%s1777_s2] ss:$0 sm:$0xff] }
  0x18   :  { %v1033_v47 = vor.u32 %v1176_v43, %v1030_v44 }
  0x1a   :  { %416 = vmatpush.bf16.msra.mxu0 %v1195_v12  ;;  %1350 = vmatpush.bf16.msra.mxu3 %v1195_v12  ;;  %v1013_v12 = vor.u32 %v1173_v6, %v1012_v4  ;;  %v1046_v4 = vld [vmem:[%s1776_s0 + $0x98] sm:$0xf0] }
  0x1b   :  { %505 = vmatpush.bf16.msra.mxu1 %v1203_v13 }
  0x1e   :  { %417 = vmatpush.bf16.msra.mxu0 %v1194_v14  ;;  %1351 = vmatpush.bf16.msra.mxu3 %v1194_v14 }
  0x1f   :  { %506 = vmatpush.bf16.msra.mxu1 %v1202_v19 }
  0x21   :  { %418 = vmatmul.bf16.vlgmr.msra.gmra.mxu0 %v973_v22  ;;  %478 = vmatmul.bf16.vlgmr.msra.gmra.mxu3 %v1069_v23  ;;  %v1221_v22 = vunpack.c.h.bf16 %v1323_v20  ;;  %v1020_v23 = vld [vmem:[%s1776_s0 + $0x60] sm:$0xf] }
  0x22   :  { %1352 = vmatpush.bf16.msrb.mxu3 %v1209_v1  ;;  %507 = vmatmul.bf16.vlgmr.msra.gmra.mxu1 %v977_v24  ;;  %v1237_v1 = vunpack.c.h.bf16 %v1327_v62  ;;  %v1220_v24 = vunpack.c.l.bf16 %v1323_v20  ;;  %v1183_v20 = vld [vmem:[%s1776_s0 + $0xa4] sm:$0xf0] }
  0x24   :  { %789 = vmatpush.msra.mxu2 %v1237_v1 }
  0x26   :  { %1353 = vmatpush.bf16.msrb.mxu3 %v1208_v3  ;;  %v1236_v3 = vunpack.c.l.bf16 %v1327_v62 }
  0x28   :  { %790 = vmatpush.msra.mxu2 %v1236_v3 }
  0x2a   :  { %1354 = vmatpush.bf16.msrb.mxu3 %v1207_v5  ;;  %v1233_v5 = vunpack.c.h.bf16 %v1326_v2 }
  0x2c   :  { %791 = vmatpush.msra.mxu2 %v1233_v5 }
  0x2e   :  { %1355 = vmatpush.bf16.msrb.mxu3 %v1206_v7  ;;  %v1188_v7 = vld [vmem:[%s1776_s0 + $0xd4] sm:$0xf] }
  0x31   :  { %423 = vmatmul.bf16.gmra.mxu0 %v981_v31  ;;  %483 = vmatmul.bf16.gmra.mxu3 %v1077_v32  ;;  %v1021_v31 = vor.u32 %v1175_v25, %v1020_v23  ;;  %v1089_v32 = vor.u32 %v1190_v26, %v1086_v27 }
  0x32   :  { %1356 = vmatpush.bf16.msrb.mxu3 %v1205_v9  ;;  %512 = vmatmul.bf16.gmra.mxu1 %v985_v33  ;;  %v1172_v9 = vld [vmem:[%s1776_s0 + $0x54] sm:$0xf]  ;;  %v1217_v33 = vunpack.c.h.bf16 %v1322_v30 }
  0x33   :  { %v1017_v14 = vor.u32 %v1172_v9, %v1014_v10 }
  0x36   :  { %1357 = vmatpush.bf16.msrb.mxu3 %v1204_v11  ;;  %v1232_v11 = vunpack.c.l.bf16 %v1326_v2  ;;  %v1181_v2 = vld [vmem:[%s1776_s0 + $0x94] sm:$0xf0] }
  0x38   :  { %792 = vmatpush.msra.mxu2 %v1232_v11 }
  0x3a   :  { %1358 = vmatpush.bf16.msrb.mxu3 %v1203_v13  ;;  %v1081_v13 = vor.u32 %v1188_v7, %v1078_v8  ;;  %793 = vmatpush.msra.mxu2 %v1229_v16 }
  0x3c   :  { %794 = vmatpush.msra.mxu2 %v1228_v17 }
  0x3e   :  { %1359 = vmatpush.bf16.msrb.mxu3 %v1202_v19  ;;  %v1225_v19 = vunpack.c.h.bf16 %v1324_v18 }
  0x40   :  { %795 = vmatpush.msra.mxu2 %v1225_v19 }
  0x41   :  { %428 = vmatmul.bf16.gmra.mxu0 %v989_v40  ;;  %488 = vmatmul.bf16.gmra.mxu3 %v1085_v41  ;;  %v1177_v40 = vld [vmem:[%s1776_s0 + $0x74] sm:$0xf0]  ;;  %v1192_v41 = vld [vmem:[%s1776_s0 + $0xf4] sm:$0xf] }
  0x42   :  { %517 = vmatmul.bf16.gmra.mxu1 %v993_v42  ;;  %1360 = vmatpush.msra.mxu3 %v1241_v63  ;;  %v1094_v42 = vld [vmem:[%s1776_s0 + $0xf8] sm:$0xf0]  ;;  %v1029_v45 = vor.u32 %v1177_v40, %v1028_v39  ;;  %v1184_v39 = vld [vmem:[%s1776_s0 + $0xb4] sm:$0xf] }
  0x43   :  { %796 = vmatpush.msra.mxu2 %v1224_v21  ;;  %v1097_v46 = vor.u32 %v1192_v41, %v1094_v42  ;;  %v1062_v40 = vld [vmem:[%s1776_s0 + $0xb8] sm:$0xf0] }
  0x44   :  { %1361 = vmatpush.msra.mxu3 %v1240_v0 }
  0x45   :  { %797 = vmatpush.msra.mxu2 %v1221_v22 }
  0x46   :  { %1362 = vmatpush.msra.mxu3 %v1237_v1  ;;  %v1044_v1 = vld [vmem:[%s1776_s0 + $0x90] sm:$0xf] }
  0x47   :  { %798 = vmatpush.msra.mxu2 %v1220_v24  ;;  %v1045_v7 = vor.u32 %v1181_v2, %v1044_v1 }
  0x48   :  { %1363 = vmatpush.msra.mxu3 %v1236_v3  ;;  %v1180_v3 = vld [vmem:[%s1776_s0 + $0x94] sm:$0xf] }
  0x49   :  { %799 = vmatpush.msra.mxu2 %v1217_v33  ;;  %v1049_v9 = vor.u32 %v1180_v3, %v1046_v4 }
  0x4a   :  { %1364 = vmatpush.msra.mxu3 %v1233_v5 }
  0x4b   :  { %800 = vmatpush.msra.mxu2 %v1216_v35 }
  0x4c   :  { %1365 = vmatpush.msra.mxu3 %v1232_v11 }
  0x4d   :  { %801 = vmatpush.msra.mxu2 %v1213_v37 }
  0x4e   :  { %1366 = vmatpush.msra.mxu3 %v1229_v16 }
  0x4f   :  { %802 = vmatpush.msra.mxu2 %v1212_v38 }
  0x50   :  { %1367 = vmatpush.msra.mxu3 %v1228_v17 }
  0x51   :  { %433 = vmatmul.bf16.gmra.mxu0 %v997_v49  ;;  %493 = vmatmul.bf16.gmra.mxu3 %v1093_v50  ;;  %v1179_v49 = vld [vmem:[%s1776_s0 + $0x84] sm:$0xf0]  ;;  %v1178_v50 = vld [vmem:[%s1776_s0 + $0x84] sm:$0xf] }
  0x52   :  { %522 = vmatmul.bf16.gmra.mxu1 %v1001_v51  ;;  %1368 = vmatpush.msra.mxu3 %v1225_v19  ;;  %v1038_v51 = vld [vmem:[%s1776_s0 + $0x88] sm:$0xf0]  ;;  %v1037_v52 = vor.u32 %v1179_v49, %v1036_v48  ;;  %v1052_v19 = vld [vmem:[%s1776_s0 + $0xa0] sm:$0xf] }
  0x53   :  { %v1041_v54 = vor.u32 %v1178_v50, %v1038_v51  ;;  %v1053_v25 = vor.u32 %v1183_v20, %v1052_v19 }
  0x54   :  { %1369 = vmatpush.msra.mxu3 %v1224_v21  ;;  %v1182_v21 = vld [vmem:[%s1776_s0 + $0xa4] sm:$0xf] }
  0x56   :  { %1370 = vmatpush.msra.mxu3 %v1221_v22  ;;  %v1054_v22 = vld [vmem:[%s1776_s0 + $0xa8] sm:$0xf0] }
  0x57   :  { %v1057_v27 = vor.u32 %v1182_v21, %v1054_v22 }
  0x58   :  { %1371 = vmatpush.msra.mxu3 %v1220_v24 }
  0x5a   :  { %1372 = vmatpush.msra.mxu3 %v1217_v33 }
  0x5c   :  { %1373 = vmatpush.msra.mxu3 %v1216_v35 }
  0x5e   :  { %1374 = vmatpush.msra.mxu3 %v1213_v37  ;;  %v1060_v37 = vld [vmem:[%s1776_s0 + $0xb0] sm:$0xf] }
  0x60   :  { %1375 = vmatpush.msra.mxu3 %v1212_v38  ;;  %v1185_v38 = vld [vmem:[%s1776_s0 + $0xb4] sm:$0xf0] }
  0x61   :  { %438 = vmatmul.bf16.gmra.mxu0 %v1005_v58  ;;  %567 = vmatmul.bf16.vlgmr.msrb.gmra.mxu3 %v1073_v59  ;;  %v1061_v43 = vor.u32 %v1185_v38, %v1060_v37 }
  0x62   :  { %527 = vmatmul.bf16.gmra.mxu1 %v1009_v60 }
  0x71   :  { %443 = vmatmul.bf16.gmra.mxu0 %v1013_v12  ;;  %572 = vmatmul.bf16.gmra.mxu3 %v1081_v13 }
  0x72   :  { %532 = vmatmul.bf16.gmra.mxu1 %v1017_v14 }
  0x81   :  { %448 = vmatmul.bf16.gmra.mxu0 %v1021_v31  ;;  %577 = vmatmul.bf16.gmra.mxu3 %v1089_v32 }
  0x82   :  { %537 = vmatmul.bf16.gmra.mxu1 %v1025_v34 }
  0x91   :  { %453 = vmatmul.bf16.gmra.mxu0 %v1029_v45  ;;  %582 = vmatmul.bf16.gmra.mxu3 %v1097_v46  ;;  %v1065_v45 = vor.u32 %v1184_v39, %v1062_v40 }
  0x92   :  { %542 = vmatmul.bf16.gmra.mxu1 %v1033_v47 }
  0x9e   :  { %v419_v53 = vpop.f32.mrf.mxu0 }
  0x9f   :  { %v508_v56 = vpop.f32.mrf.mxu1 }
  0xa0   :  { %v509_v57 = vadd.f32 %v508_v56, %v419_v53 }
  0xa1   :  { %458 = vmatmul.bf16.gmra.mxu0 %v1037_v52 }
  0xa2   :  { %547 = vmatmul.bf16.gmra.mxu1 %v1041_v54  ;;  %v691_v58 = vadd.f32 %v1633_v55, %v509_v57 }
  0xa4   :  { %v1636_v59 = vpop.f32.mrf.mxu3  ;;  %v723_v60 = vmax.f32 %v691_v58, 0.0 }
  0xa6   :  { %803 = vmatmul.f32.vlgmr.msra.gmra.mxu2 %v723_v60  ;;  %v421_v61 = vpop.f32.mrf.mxu0 }
  0xa7   :  { %v510_v62 = vpop.f32.mrf.mxu1 }
  0xa8   :  { %v511_v63 = vadd.f32 %v510_v62, %v421_v61 }
  0xaa   :  { %v692_v0 = vadd.f32 %v1633_v55, %v511_v63 }
  0xac   :  { %v1651_v5 = vpop.f32.mrf.mxu3  ;;  %v724_v6 = vmax.f32 %v692_v0, 0.0 }
  0xae   :  { %806 = vmatmul.f32.gmra.mxu2 %v724_v6  ;;  %v424_v8 = vpop.f32.mrf.mxu0 }
  0xaf   :  { %v513_v10 = vpop.f32.mrf.mxu1 }
  0xb0   :  { %v514_v11 = vadd.f32 %v513_v10, %v424_v8 }
  0xb1   :  { %463 = vmatmul.bf16.gmra.mxu0 %v1045_v7 }
  0xb2   :  { %552 = vmatmul.bf16.gmra.mxu1 %v1049_v9  ;;  %v693_v12 = vadd.f32 %v1633_v55, %v514_v11 }
  0xb4   :  { %v1654_v13 = vpop.f32.mrf.mxu3  ;;  %v725_v14 = vmax.f32 %v693_v12, 0.0 }
  0xb6   :  { %809 = vmatmul.f32.gmra.mxu2 %v725_v14  ;;  %v426_v15 = vpop.f32.mrf.mxu0 }
  0xb7   :  { %v515_v16 = vpop.f32.mrf.mxu1 }
  0xb8   :  { %v516_v17 = vadd.f32 %v515_v16, %v426_v15 }
  0xba   :  { %v694_v18 = vadd.f32 %v1633_v55, %v516_v17 }
  0xbc   :  { %v1669_v23 = vpop.f32.mrf.mxu3  ;;  %v726_v24 = vmax.f32 %v694_v18, 0.0 }
  0xbe   :  { %812 = vmatmul.f32.gmra.mxu2 %v726_v24  ;;  %v429_v26 = vpop.f32.mrf.mxu0 }
  0xbf   :  { %v518_v28 = vpop.f32.mrf.mxu1 }
  0xc0   :  { %v519_v29 = vadd.f32 %v518_v28, %v429_v26 }
  0xc1   :  { %468 = vmatmul.bf16.gmra.mxu0 %v1053_v25 }
  0xc2   :  { %557 = vmatmul.bf16.gmra.mxu1 %v1057_v27  ;;  %v695_v30 = vadd.f32 %v1633_v55, %v519_v29 }
  0xc4   :  { %v1672_v31 = vpop.f32.mrf.mxu3  ;;  %v727_v32 = vmax.f32 %v695_v30, 0.0 }
  0xc6   :  { %815 = vmatmul.f32.gmra.mxu2 %v727_v32  ;;  %v431_v33 = vpop.f32.mrf.mxu0 }
  0xc7   :  { %v520_v34 = vpop.f32.mrf.mxu1 }
  0xc8   :  { %v521_v35 = vadd.f32 %v520_v34, %v431_v33 }
  0xca   :  { %v696_v36 = vadd.f32 %v1633_v55, %v521_v35 }
  0xcc   :  { %v1687_v41 = vpop.f32.mrf.mxu3  ;;  %v728_v42 = vmax.f32 %v696_v36, 0.0 }
  0xce   :  { %818 = vmatmul.f32.gmra.mxu2 %v728_v42  ;;  %v434_v44 = vpop.f32.mrf.mxu0 }
  0xcf   :  { %v523_v46 = vpop.f32.mrf.mxu1 }
  0xd0   :  { %v524_v47 = vadd.f32 %v523_v46, %v434_v44 }
  0xd1   :  { %473 = vmatmul.bf16.gmra.mxu0 %v1061_v43 }
  0xd2   :  { %562 = vmatmul.bf16.gmra.mxu1 %v1065_v45  ;;  %v697_v48 = vadd.f32 %v1633_v55, %v524_v47 }
  0xd4   :  { %v1690_v49 = vpop.f32.mrf.mxu3  ;;  %v729_v50 = vmax.f32 %v697_v48, 0.0 }
  0xd6   :  { %821 = vmatmul.f32.gmra.mxu2 %v729_v50  ;;  %v436_v51 = vpop.f32.mrf.mxu0 }
  0xd7   :  { %v525_v52 = vpop.f32.mrf.mxu1 }
  0xd8   :  { %v526_v53 = vadd.f32 %v525_v52, %v436_v51 }
  0xda   :  { %v698_v54 = vadd.f32 %v1633_v55, %v526_v53 }
  0xdc   :  { %v1693_v56 = vpop.f32.mrf.mxu3  ;;  %v730_v57 = vmax.f32 %v698_v54, 0.0 }
  0xde   :  { %824 = vmatmul.f32.gmra.mxu2 %v730_v57  ;;  %v439_v58 = vpop.f32.mrf.mxu0 }
  0xdf   :  { %v528_v60 = vpop.f32.mrf.mxu1 }
  0xe0   :  { %v529_v61 = vadd.f32 %v528_v60, %v439_v58 }
  0xe2   :  { %v699_v62 = vadd.f32 %v1633_v55, %v529_v61 }
  0xe4   :  { %v568_v63 = vpop.f32.mrf.mxu3  ;;  %v731_v0 = vmax.f32 %v699_v62, 0.0 }
  0xe5   :  { %v569_v1 = vadd.f32 %v568_v63, %v1636_v59 }
  0xe6   :  { %827 = vmatmul.f32.gmra.mxu2 %v731_v0  ;;  %v441_v2 = vpop.f32.mrf.mxu0 }
  0xe7   :  { %v715_v3 = vadd.f32 %v1633_v55, %v569_v1  ;;  %v530_v4 = vpop.f32.mrf.mxu1 }
  0xe8   :  { %v531_v6 = vadd.f32 %v530_v4, %v441_v2 }
  0xe9   :  { %v747_v7 = vmax.f32 %v715_v3, 0.0 }
  0xea   :  { %v700_v8 = vadd.f32 %v1633_v55, %v531_v6 }
  0xeb   :  { %875 = vmatmul.f32.vlgmr.msra.gmra.mxu3 %v747_v7 }
  0xec   :  { %v570_v9 = vpop.f32.mrf.mxu3  ;;  %v732_v10 = vmax.f32 %v700_v8, 0.0 }
  0xed   :  { %v571_v11 = vadd.f32 %v570_v9, %v1651_v5 }
  0xee   :  { %830 = vmatmul.f32.gmra.mxu2 %v732_v10  ;;  %v444_v12 = vpop.f32.mrf.mxu0 }
  0xef   :  { %v533_v14 = vpop.f32.mrf.mxu1  ;;  %v716_v15 = vadd.f32 %v1633_v55, %v571_v11 }
  0xf0   :  { %v534_v59 = vadd.f32 %v533_v14, %v444_v12 }
  0xf1   :  { %v748_v16 = vmax.f32 %v716_v15, 0.0 }
  0xf2   :  { %v701_v17 = vadd.f32 %v1633_v55, %v534_v59 }
  0xf3   :  { %878 = vmatmul.f32.gmra.mxu3 %v748_v16 }
  0xf4   :  { %v573_v18 = vpop.f32.mrf.mxu3  ;;  %v733_v19 = vmax.f32 %v701_v17, 0.0 }
  0xf5   :  { %v574_v20 = vadd.f32 %v573_v18, %v1654_v13 }
  0xf6   :  { %833 = vmatmul.f32.gmra.mxu2 %v733_v19  ;;  %v446_v21 = vpop.f32.mrf.mxu0 }
  0xf7   :  { %v535_v22 = vpop.f32.mrf.mxu1  ;;  %v717_v24 = vadd.f32 %v1633_v55, %v574_v20 }
  0xf8   :  { %v536_v5 = vadd.f32 %v535_v22, %v446_v21 }
  0xf9   :  { %v749_v25 = vmax.f32 %v717_v24, 0.0 }
  0xfa   :  { %v702_v26 = vadd.f32 %v1633_v55, %v536_v5 }
  0xfb   :  { %881 = vmatmul.f32.gmra.mxu3 %v749_v25 }
  0xfc   :  { %v575_v27 = vpop.f32.mrf.mxu3  ;;  %v734_v28 = vmax.f32 %v702_v26, 0.0 }
  0xfd   :  { %v576_v29 = vadd.f32 %v575_v27, %v1669_v23 }
  0xfe   :  { %836 = vmatmul.f32.gmra.mxu2 %v734_v28  ;;  %v449_v30 = vpop.f32.mrf.mxu0 }
  0xff   :  { %v538_v32 = vpop.f32.mrf.mxu1  ;;  %v718_v33 = vadd.f32 %v1633_v55, %v576_v29 }
 0x100   :  { %v539_v13 = vadd.f32 %v538_v32, %v449_v30 }
 0x101   :  { %v750_v34 = vmax.f32 %v718_v33, 0.0 }
 0x102   :  { %v703_v35 = vadd.f32 %v1633_v55, %v539_v13 }
 0x103   :  { %884 = vmatmul.f32.gmra.mxu3 %v750_v34 }
 0x104   :  { %v578_v36 = vpop.f32.mrf.mxu3  ;;  %v735_v37 = vmax.f32 %v703_v35, 0.0 }
 0x105   :  { %v579_v38 = vadd.f32 %v578_v36, %v1672_v31 }
 0x106   :  { %839 = vmatmul.f32.gmra.mxu2 %v735_v37  ;;  %v451_v39 = vpop.f32.mrf.mxu0 }
 0x107   :  { %v540_v40 = vpop.f32.mrf.mxu1  ;;  %v719_v42 = vadd.f32 %v1633_v55, %v579_v38 }
 0x108   :  { %v541_v23 = vadd.f32 %v540_v40, %v451_v39 }
 0x109   :  { %v751_v43 = vmax.f32 %v719_v42, 0.0 }
 0x10a   :  { %v704_v44 = vadd.f32 %v1633_v55, %v541_v23 }
 0x10b   :  { %887 = vmatmul.f32.gmra.mxu3 %v751_v43 }
 0x10c   :  { %v580_v45 = vpop.f32.mrf.mxu3  ;;  %v736_v46 = vmax.f32 %v704_v44, 0.0 }
 0x10d   :  { %v581_v47 = vadd.f32 %v580_v45, %v1687_v41 }
 0x10e   :  { %842 = vmatmul.f32.gmra.mxu2 %v736_v46  ;;  %v454_v48 = vpop.f32.mrf.mxu0 }
 0x10f   :  { %v543_v50 = vpop.f32.mrf.mxu1  ;;  %v720_v51 = vadd.f32 %v1633_v55, %v581_v47 }
 0x110   :  { %v544_v31 = vadd.f32 %v543_v50, %v454_v48 }
 0x111   :  { %v752_v52 = vmax.f32 %v720_v51, 0.0 }
 0x112   :  { %v705_v53 = vadd.f32 %v1633_v55, %v544_v31 }
 0x113   :  { %890 = vmatmul.f32.gmra.mxu3 %v752_v52 }
 0x114   :  { %v583_v54 = vpop.f32.mrf.mxu3  ;;  %v737_v57 = vmax.f32 %v705_v53, 0.0 }
 0x115   :  { %v584_v58 = vadd.f32 %v583_v54, %v1690_v49 }
 0x116   :  { %845 = vmatmul.f32.gmra.mxu2 %v737_v57  ;;  %v456_v60 = vpop.f32.mrf.mxu0 }
 0x117   :  { %v545_v61 = vpop.f32.mrf.mxu1  ;;  %v721_v62 = vadd.f32 %v1633_v55, %v584_v58 }
 0x118   :  { %v546_v41 = vadd.f32 %v545_v61, %v456_v60 }
 0x119   :  { %v753_v63 = vmax.f32 %v721_v62, 0.0 }
 0x11a   :  { %v706_v0 = vadd.f32 %v1633_v55, %v546_v41 }
 0x11b   :  { %893 = vmatmul.f32.gmra.mxu3 %v753_v63 }
 0x11c   :  { %v585_v1 = vpop.f32.mrf.mxu3  ;;  %v738_v2 = vmax.f32 %v706_v0, 0.0 }
 0x11d   :  { %v586_v3 = vadd.f32 %v585_v1, %v1693_v56 }
 0x11e   :  { %848 = vmatmul.f32.gmra.mxu2 %v738_v2  ;;  %v459_v4 = vpop.f32.mrf.mxu0 }
 0x11f   :  { %v548_v6 = vpop.f32.mrf.mxu1  ;;  %v722_v7 = vadd.f32 %v1633_v55, %v586_v3 }
 0x120   :  { %v549_v49 = vadd.f32 %v548_v6, %v459_v4 }
 0x121   :  { %v754_v8 = vmax.f32 %v722_v7, 0.0 }
 0x122   :  { %v707_v9 = vadd.f32 %v1633_v55, %v549_v49 }
 0x123   :  { %896 = vmatmul.f32.gmra.mxu3 %v754_v8 }
 0x124   :  { %v739_v10 = vmax.f32 %v707_v9, 0.0 }
 0x126   :  { %851 = vmatmul.f32.gmra.mxu2 %v739_v10  ;;  %v461_v11 = vpop.f32.mrf.mxu0 }
 0x127   :  { %v550_v12 = vpop.f32.mrf.mxu1 }
 0x128   :  { %v551_v14 = vadd.f32 %v550_v12, %v461_v11 }
 0x129   :  { %v804_v15 = vpop.f32.mrf.mxu2 }
 0x12a   :  { %v708_v59 = vadd.f32 %v1633_v55, %v551_v14 }
 0x12c   :  { %v740_v16 = vmax.f32 %v708_v59, 0.0 }
 0x12e   :  { %854 = vmatmul.f32.gmra.mxu2 %v740_v16  ;;  %v464_v56 = vpop.f32.mrf.mxu0 }
 0x12f   :  { %v553_v17 = vpop.f32.mrf.mxu1 }
 0x130   :  { %v554_v18 = vadd.f32 %v553_v17, %v464_v56 }
 0x131   :  { %v807_v19 = vpop.f32.mrf.mxu2 }
 0x132   :  { %v1245_v20 = vpack.c.bf16 %v807_v19, %v804_v15  ;;  %v709_v21 = vadd.f32 %v1633_v55, %v554_v18 }
 0x134   :  { %1246 = vst [vmem:[%s1779_s4] sm:$0xff] %v1245_v20   ;;  %v741_v22 = vmax.f32 %v709_v21, 0.0 }
 0x136   :  { %857 = vmatmul.f32.gmra.mxu2 %v741_v22  ;;  %v466_v24 = vpop.f32.mrf.mxu0 }
 0x137   :  { %v555_v5 = vpop.f32.mrf.mxu1 }
 0x138   :  { %v556_v25 = vadd.f32 %v555_v5, %v466_v24 }
 0x139   :  { %v810_v26 = vpop.f32.mrf.mxu2 }
 0x13a   :  { %v710_v27 = vadd.f32 %v1633_v55, %v556_v25 }
 0x13c   :  { %v742_v28 = vmax.f32 %v710_v27, 0.0 }
 0x13e   :  { %860 = vmatmul.f32.gmra.mxu2 %v742_v28  ;;  %v469_v29 = vpop.f32.mrf.mxu0 }
 0x13f   :  { %v558_v30 = vpop.f32.mrf.mxu1 }
 0x140   :  { %v559_v32 = vadd.f32 %v558_v30, %v469_v29 }
 0x141   :  { %v813_v33 = vpop.f32.mrf.mxu2 }
 0x142   :  { %v1250_v13 = vpack.c.bf16 %v813_v33, %v810_v26  ;;  %v711_v34 = vadd.f32 %v1633_v55, %v559_v32 }
 0x144   :  { %1329 = vst [vmem:[%s1779_s4 + $0x8] sm:$0xff] %v1250_v13   ;;  %v743_v35 = vmax.f32 %v711_v34, 0.0 }
 0x146   :  { %863 = vmatmul.f32.gmra.mxu2 %v743_v35  ;;  %v471_v36 = vpop.f32.mrf.mxu0 }
 0x147   :  { %v560_v37 = vpop.f32.mrf.mxu1 }
 0x148   :  { %v561_v38 = vadd.f32 %v560_v37, %v471_v36 }
 0x149   :  { %v816_v39 = vpop.f32.mrf.mxu2 }
 0x14a   :  { %v712_v40 = vadd.f32 %v1633_v55, %v561_v38 }
 0x14c   :  { %v744_v42 = vmax.f32 %v712_v40, 0.0 }
 0x14e   :  { %866 = vmatmul.f32.gmra.mxu2 %v744_v42  ;;  %v474_v23 = vpop.f32.mrf.mxu0 }
 0x14f   :  { %v563_v43 = vpop.f32.mrf.mxu1 }
 0x150   :  { %v564_v44 = vadd.f32 %v563_v43, %v474_v23 }
 0x151   :  { %v819_v45 = vpop.f32.mrf.mxu2 }
 0x152   :  { %v1255_v46 = vpack.c.bf16 %v819_v45, %v816_v39  ;;  %v713_v47 = vadd.f32 %v1633_v55, %v564_v44 }
 0x154   :  { %1330 = vst [vmem:[%s1779_s4 + $0x10] sm:$0xff] %v1255_v46   ;;  %v745_v48 = vmax.f32 %v713_v47, 0.0 }
 0x156   :  { %869 = vmatmul.f32.gmra.mxu2 %v745_v48  ;;  %v476_v50 = vpop.f32.mrf.mxu0 }
 0x157   :  { %v565_v51 = vpop.f32.mrf.mxu1 }
 0x158   :  { %v566_v31 = vadd.f32 %v565_v51, %v476_v50 }
 0x159   :  { %v822_v52 = vpop.f32.mrf.mxu2 }
 0x15a   :  { %v714_v53 = vadd.f32 %v1633_v55, %v566_v31 }
 0x15c   :  { %v746_v54 = vmax.f32 %v714_v53, 0.0 }
 0x15e   :  { %872 = vmatmul.f32.gmra.mxu2 %v746_v54 }
 0x161   :  { %v825_v57 = vpop.f32.mrf.mxu2 }
 0x162   :  { %v1260_v58 = vpack.c.bf16 %v825_v57, %v822_v52 }
 0x164   :  { %1331 = vst [vmem:[%s1779_s4 + $0x18] sm:$0xff] %v1260_v58  }
 0x169   :  { %v828_v60 = vpop.f32.mrf.mxu2 }
 0x16e   :  { %v876_v61 = vpop.f32.mrf.mxu3 }
 0x171   :  { %v831_v62 = vpop.f32.mrf.mxu2 }
 0x172   :  { %v1265_v41 = vpack.c.bf16 %v831_v62, %v828_v60 }
 0x174   :  { %1332 = vst [vmem:[%s1779_s4 + $0x20] sm:$0xff] %v1265_v41  }
 0x176   :  { %v879_v63 = vpop.f32.mrf.mxu3 }
 0x177   :  { %v1305_v0 = vpack.c.bf16 %v879_v63, %v876_v61 }
 0x179   :  { %1340 = vst [vmem:[%s1779_s4 + $0x60] sm:$0xff] %v1305_v0   ;;  %v834_v55 = vpop.f32.mrf.mxu2 }
 0x17e   :  { %v882_v1 = vpop.f32.mrf.mxu3 }
 0x181   :  { %v837_v2 = vpop.f32.mrf.mxu2 }
 0x182   :  { %v1270_v3 = vpack.c.bf16 %v837_v2, %v834_v55 }
 0x184   :  { %1333 = vst [vmem:[%s1779_s4 + $0x28] sm:$0xff] %v1270_v3  }
 0x186   :  { %v885_v4 = vpop.f32.mrf.mxu3 }
 0x187   :  { %v1310_v6 = vpack.c.bf16 %v885_v4, %v882_v1 }
 0x189   :  { %1341 = vst [vmem:[%s1779_s4 + $0x68] sm:$0xff] %v1310_v6   ;;  %v840_v7 = vpop.f32.mrf.mxu2 }
 0x18e   :  { %v888_v49 = vpop.f32.mrf.mxu3 }
 0x191   :  { %v843_v8 = vpop.f32.mrf.mxu2 }
 0x192   :  { %v1275_v9 = vpack.c.bf16 %v843_v8, %v840_v7 }
 0x194   :  { %1334 = vst [vmem:[%s1779_s4 + $0x30] sm:$0xff] %v1275_v9  }
 0x196   :  { %v891_v10 = vpop.f32.mrf.mxu3 }
 0x197   :  { %v1315_v11 = vpack.c.bf16 %v891_v10, %v888_v49 }
 0x199   :  { %1342 = vst [vmem:[%s1779_s4 + $0x70] sm:$0xff] %v1315_v11   ;;  %v846_v12 = vpop.f32.mrf.mxu2 }
 0x19e   :  { %v894_v14 = vpop.f32.mrf.mxu3 }
 0x1a1   :  { %v849_v15 = vpop.f32.mrf.mxu2 }
 0x1a2   :  { %v1280_v59 = vpack.c.bf16 %v849_v15, %v846_v12 }
 0x1a4   :  { %1335 = vst [vmem:[%s1779_s4 + $0x38] sm:$0xff] %v1280_v59  }
 0x1a6   :  { %v897_v16 = vpop.f32.mrf.mxu3 }
 0x1a7   :  { %v1320_v56 = vpack.c.bf16 %v897_v16, %v894_v14 }
 0x1a9   :  { %1343 = vst [vmem:[%s1779_s4 + $0x78] sm:$0xff] %v1320_v56   ;;  %v852_v17 = vpop.f32.mrf.mxu2 }
 0x1b1   :  { %v855_v18 = vpop.f32.mrf.mxu2 }
 0x1b2   :  { %v1285_v19 = vpack.c.bf16 %v855_v18, %v852_v17 }
 0x1b4   :  { %1336 = vst [vmem:[%s1779_s4 + $0x40] sm:$0xff] %v1285_v19  }
 0x1b9   :  { %v858_v20 = vpop.f32.mrf.mxu2 }
 0x1c1   :  { %v861_v21 = vpop.f32.mrf.mxu2 }
 0x1c2   :  { %v1290_v22 = vpack.c.bf16 %v861_v21, %v858_v20 }
 0x1c4   :  { %1337 = vst [vmem:[%s1779_s4 + $0x48] sm:$0xff] %v1290_v22  }
 0x1c9   :  { %v864_v24 = vpop.f32.mrf.mxu2 }
 0x1d1   :  { %v867_v5 = vpop.f32.mrf.mxu2 }
 0x1d2   :  { %v1295_v25 = vpack.c.bf16 %v867_v5, %v864_v24 }
 0x1d4   :  { %1338 = vst [vmem:[%s1779_s4 + $0x50] sm:$0xff] %v1295_v25  }
 0x1d9   :  { %v870_v26 = vpop.f32.mrf.mxu2 }
 0x1e1   :  { %v873_v27 = vpop.f32.mrf.mxu2 }
 0x1e2   :  { %v1300_v28 = vpack.c.bf16 %v873_v27, %v870_v26 }
 0x1e4   :  { %1339 = vst [vmem:[%s1779_s4 + $0x58] sm:$0xff] %v1300_v28  }

// kernel: gcn_feedforward.3
= control target key start
LH: loop header
LB: loop body
LE: loop exit
PB: predicated region body
PF: predicated region fallthrough
CT: control target
= control target key end

     0   :  { %s1408_s1 = inlined_call_operand.vmem [shape: bf16[256,128], index: 1, kind: input, shape index: {}]   ;;  %s1409_s0 = inlined_call_operand.vmem [shape: bf16[256,256], index: 0, kind: input, shape index: {}]   ;;  %s1410_s2 = inlined_call_operand.vmem [shape: f32[1,128], index: 2, kind: input, shape index: {}]   ;;  %s1411_s3 = inlined_call_operand.vmem [shape: f32[256,128], index: 3, kind: output, shape index: {}]  }
   0x1   :  { %v989_v0 = vld [vmem:[%s1408_s1 + $0x38] sm:$0xff]  ;;  %v988_v2 = vld [vmem:[%s1408_s1 + $0x30] sm:$0xff]  ;;  %v987_v4 = vld [vmem:[%s1408_s1 + $0x28] sm:$0xff] }
   0x2   :  { %v997_v1 = vld [vmem:[%s1408_s1 + $0x78] sm:$0xff]  ;;  %407 = vmatpush.bf16.msra.mxu0 %v989_v0  ;;  %998 = vmatpush.bf16.msra.mxu2 %v989_v0  ;;  %v996_v3 = vld [vmem:[%s1408_s1 + $0x70] sm:$0xff]  ;;  %v995_v5 = vld [vmem:[%s1408_s1 + $0x68] sm:$0xff] }
   0x3   :  { %496 = vmatpush.bf16.msra.mxu1 %v997_v1  ;;  %1006 = vmatpush.bf16.msra.mxu3 %v997_v1  ;;  %v986_v6 = vld [vmem:[%s1408_s1 + $0x20] sm:$0xff]  ;;  %v985_v8 = vld [vmem:[%s1408_s1 + $0x18] sm:$0xff]  ;;  %v984_v10 = vld [vmem:[%s1408_s1 + $0x10] sm:$0xff] }
   0x4   :  { %v994_v7 = vld [vmem:[%s1408_s1 + $0x60] sm:$0xff]  ;;  %v993_v9 = vld [vmem:[%s1408_s1 + $0x58] sm:$0xff]  ;;  %v992_v11 = vld [vmem:[%s1408_s1 + $0x50] sm:$0xff] }
   0x5   :  { %v983_v12 = vld [vmem:[%s1408_s1 + $0x8] sm:$0xff]  ;;  %v982_v14 = vld [vmem:[%s1408_s1] sm:$0xff]  ;;  %v768_v28 = vld [vmem:[%s1409_s0 + $0x10] sm:$0xf] }
   0x6   :  { %408 = vmatpush.bf16.msra.mxu0 %v988_v2  ;;  %999 = vmatpush.bf16.msra.mxu2 %v988_v2  ;;  %v991_v13 = vld [vmem:[%s1408_s1 + $0x48] sm:$0xff]  ;;  %v990_v15 = vld [vmem:[%s1408_s1 + $0x40] sm:$0xff]  ;;  %v953_v29 = vld [vmem:[%s1409_s0 + $0x14] sm:$0xf0] }
   0x7   :  { %497 = vmatpush.bf16.msra.mxu1 %v996_v3  ;;  %1007 = vmatpush.bf16.msra.mxu3 %v996_v3  ;;  %v760_v16 = vld [vmem:[%s1409_s0] sm:$0xf]  ;;  %v951_v17 = vld [vmem:[%s1409_s0 + $0x4] sm:$0xf0]  ;;  %v950_v20 = vld [vmem:[%s1409_s0 + $0x4] sm:$0xf]  ;;  %v769_v36 = vor.u32 %v953_v29, %v768_v28 }
   0x8   :  { %v824_v18 = vld [vmem:[%s1409_s0 + $0x80] sm:$0xf]  ;;  %v967_v19 = vld [vmem:[%s1409_s0 + $0x84] sm:$0xf0]  ;;  %v762_v21 = vld [vmem:[%s1409_s0 + $0x8] sm:$0xf0]  ;;  %v761_v24 = vor.u32 %v951_v17, %v760_v16 }
   0x9   :  { %v966_v22 = vld [vmem:[%s1409_s0 + $0x84] sm:$0xf]  ;;  %v826_v23 = vld [vmem:[%s1409_s0 + $0x88] sm:$0xf0]  ;;  %v825_v25 = vor.u32 %v967_v19, %v824_v18  ;;  %v765_v26 = vor.u32 %v950_v20, %v762_v21  ;;  %v832_v30 = vld [vmem:[%s1409_s0 + $0x90] sm:$0xf] }
   0xa   :  { %409 = vmatpush.bf16.msra.mxu0 %v987_v4  ;;  %1000 = vmatpush.bf16.msra.mxu2 %v987_v4  ;;  %v829_v27 = vor.u32 %v966_v22, %v826_v23  ;;  %v969_v31 = vld [vmem:[%s1409_s0 + $0x94] sm:$0xf0]  ;;  %v952_v32 = vld [vmem:[%s1409_s0 + $0x14] sm:$0xf]  ;;  %v770_v33 = vld [vmem:[%s1409_s0 + $0x18] sm:$0xf0] }
   0xb   :  { %498 = vmatpush.bf16.msra.mxu1 %v995_v5  ;;  %1008 = vmatpush.bf16.msra.mxu3 %v995_v5  ;;  %v968_v34 = vld [vmem:[%s1409_s0 + $0x94] sm:$0xf]  ;;  %v834_v35 = vld [vmem:[%s1409_s0 + $0x98] sm:$0xf0]  ;;  %v833_v37 = vor.u32 %v969_v31, %v832_v30  ;;  %v773_v38 = vor.u32 %v952_v32, %v770_v33  ;;  %v776_v40 = vld [vmem:[%s1409_s0 + $0x20] sm:$0xf] }
   0xc   :  { %v837_v39 = vor.u32 %v968_v34, %v834_v35  ;;  %v955_v41 = vld [vmem:[%s1409_s0 + $0x24] sm:$0xf0]  ;;  %v840_v42 = vld [vmem:[%s1409_s0 + $0xa0] sm:$0xf]  ;;  %v954_v44 = vld [vmem:[%s1409_s0 + $0x24] sm:$0xf] }
   0xd   :  { %v971_v43 = vld [vmem:[%s1409_s0 + $0xa4] sm:$0xf0]  ;;  %v778_v45 = vld [vmem:[%s1409_s0 + $0x28] sm:$0xf0]  ;;  %v970_v46 = vld [vmem:[%s1409_s0 + $0xa4] sm:$0xf]  ;;  %v777_v48 = vor.u32 %v955_v41, %v776_v40 }
   0xe   :  { %410 = vmatpush.bf16.msra.mxu0 %v986_v6  ;;  %1001 = vmatpush.bf16.msra.mxu2 %v986_v6  ;;  %v842_v47 = vld [vmem:[%s1409_s0 + $0xa8] sm:$0xf0]  ;;  %v841_v49 = vor.u32 %v971_v43, %v840_v42  ;;  %v781_v50 = vor.u32 %v954_v44, %v778_v45  ;;  %v784_v52 = vld [vmem:[%s1409_s0 + $0x30] sm:$0xf]  ;;  %v957_v53 = vld [vmem:[%s1409_s0 + $0x34] sm:$0xf0] }
   0xf   :  { %499 = vmatpush.bf16.msra.mxu1 %v994_v7  ;;  %1009 = vmatpush.bf16.msra.mxu3 %v994_v7  ;;  %v845_v51 = vor.u32 %v970_v46, %v842_v47  ;;  %v848_v54 = vld [vmem:[%s1409_s0 + $0xb0] sm:$0xf]  ;;  %v973_v55 = vld [vmem:[%s1409_s0 + $0xb4] sm:$0xf0]  ;;  %v956_v56 = vld [vmem:[%s1409_s0 + $0x34] sm:$0xf]  ;;  %v785_v60 = vor.u32 %v957_v53, %v784_v52 }
  0x10   :  { %v786_v57 = vld [vmem:[%s1409_s0 + $0x38] sm:$0xf0]  ;;  %v972_v58 = vld [vmem:[%s1409_s0 + $0xb4] sm:$0xf]  ;;  %v849_v61 = vor.u32 %v973_v55, %v848_v54  ;;  %v792_v0 = vld [vmem:[%s1409_s0 + $0x40] sm:$0xf] }
  0x11   :  { %v850_v59 = vld [vmem:[%s1409_s0 + $0xb8] sm:$0xf0]  ;;  %v789_v62 = vor.u32 %v956_v56, %v786_v57  ;;  %v959_v1 = vld [vmem:[%s1409_s0 + $0x44] sm:$0xf0]  ;;  %v856_v2 = vld [vmem:[%s1409_s0 + $0xc0] sm:$0xf] }
  0x12   :  { %411 = vmatpush.bf16.msra.mxu0 %v985_v8  ;;  %1002 = vmatpush.bf16.msra.mxu2 %v985_v8  ;;  %v853_v63 = vor.u32 %v972_v58, %v850_v59  ;;  %v975_v3 = vld [vmem:[%s1409_s0 + $0xc4] sm:$0xf0]  ;;  %v958_v4 = vld [vmem:[%s1409_s0 + $0x44] sm:$0xf]  ;;  %v794_v5 = vld [vmem:[%s1409_s0 + $0x48] sm:$0xf0]  ;;  %v793_v8 = vor.u32 %v959_v1, %v792_v0 }
  0x13   :  { %500 = vmatpush.bf16.msra.mxu1 %v993_v9  ;;  %1010 = vmatpush.bf16.msra.mxu3 %v993_v9  ;;  %v974_v6 = vld [vmem:[%s1409_s0 + $0xc4] sm:$0xf]  ;;  %v858_v7 = vld [vmem:[%s1409_s0 + $0xc8] sm:$0xf0]  ;;  %v857_v9 = vor.u32 %v975_v3, %v856_v2  ;;  %v960_v16 = vld [vmem:[%s1409_s0 + $0x54] sm:$0xf] }
  0x14   :  { %v802_v17 = vld [vmem:[%s1409_s0 + $0x58] sm:$0xf0]  ;;  %v976_v18 = vld [vmem:[%s1409_s0 + $0xd4] sm:$0xf]  ;;  %v962_v28 = vld [vmem:[%s1409_s0 + $0x64] sm:$0xf] }
  0x15   :  { %v866_v19 = vld [vmem:[%s1409_s0 + $0xd8] sm:$0xf0]  ;;  %v805_v22 = vor.u32 %v960_v16, %v802_v17  ;;  %v810_v29 = vld [vmem:[%s1409_s0 + $0x68] sm:$0xf0]  ;;  %v978_v30 = vld [vmem:[%s1409_s0 + $0xe4] sm:$0xf] }
  0x16   :  { %412 = vmatpush.bf16.msra.mxu0 %v984_v10  ;;  %1003 = vmatpush.bf16.msra.mxu2 %v984_v10  ;;  %v797_v10 = vor.u32 %v958_v4, %v794_v5  ;;  %v869_v23 = vor.u32 %v976_v18, %v866_v19  ;;  %v874_v31 = vld [vmem:[%s1409_s0 + $0xe8] sm:$0xf0]  ;;  %v813_v34 = vor.u32 %v962_v28, %v810_v29  ;;  %v964_v40 = vld [vmem:[%s1409_s0 + $0x74] sm:$0xf]  ;;  %v818_v41 = vld [vmem:[%s1409_s0 + $0x78] sm:$0xf0] }
  0x17   :  { %501 = vmatpush.bf16.msra.mxu1 %v992_v11  ;;  %1011 = vmatpush.bf16.msra.mxu3 %v992_v11  ;;  %v861_v11 = vor.u32 %v974_v6, %v858_v7  ;;  %v877_v35 = vor.u32 %v978_v30, %v874_v31  ;;  %v980_v42 = vld [vmem:[%s1409_s0 + $0xf4] sm:$0xf]  ;;  %v882_v43 = vld [vmem:[%s1409_s0 + $0xf8] sm:$0xf0]  ;;  %v821_v46 = vor.u32 %v964_v40, %v818_v41 }
  0x18   :  { %v885_v47 = vor.u32 %v980_v42, %v882_v43 }
  0x1a   :  { %413 = vmatpush.bf16.msra.mxu0 %v983_v12  ;;  %1004 = vmatpush.bf16.msra.mxu2 %v983_v12  ;;  %v800_v12 = vld [vmem:[%s1409_s0 + $0x50] sm:$0xf] }
  0x1b   :  { %502 = vmatpush.bf16.msra.mxu1 %v991_v13  ;;  %1012 = vmatpush.bf16.msra.mxu3 %v991_v13  ;;  %v961_v13 = vld [vmem:[%s1409_s0 + $0x54] sm:$0xf0] }
  0x1c   :  { %v801_v20 = vor.u32 %v961_v13, %v800_v12 }
  0x1e   :  { %414 = vmatpush.bf16.msra.mxu0 %v982_v14  ;;  %1005 = vmatpush.bf16.msra.mxu2 %v982_v14  ;;  %v864_v14 = vld [vmem:[%s1409_s0 + $0xd0] sm:$0xf] }
  0x1f   :  { %503 = vmatpush.bf16.msra.mxu1 %v990_v15  ;;  %1013 = vmatpush.bf16.msra.mxu3 %v990_v15  ;;  %v977_v15 = vld [vmem:[%s1409_s0 + $0xd4] sm:$0xf0] }
  0x20   :  { %v865_v21 = vor.u32 %v977_v15, %v864_v14 }
  0x21   :  { %415 = vmatmul.bf16.vlgmr.msra.gmra.mxu0 %v761_v24  ;;  %455 = vmatmul.bf16.vlgmr.msra.gmra.mxu2 %v825_v25  ;;  %v808_v24 = vld [vmem:[%s1409_s0 + $0x60] sm:$0xf]  ;;  %v963_v25 = vld [vmem:[%s1409_s0 + $0x64] sm:$0xf0] }
  0x22   :  { %504 = vmatmul.bf16.vlgmr.msra.gmra.mxu1 %v765_v26  ;;  %544 = vmatmul.bf16.vlgmr.msra.gmra.mxu3 %v829_v27  ;;  %v872_v26 = vld [vmem:[%s1409_s0 + $0xe0] sm:$0xf]  ;;  %v979_v27 = vld [vmem:[%s1409_s0 + $0xe4] sm:$0xf0]  ;;  %v809_v32 = vor.u32 %v963_v25, %v808_v24 }
  0x23   :  { %v873_v33 = vor.u32 %v979_v27, %v872_v26 }
  0x31   :  { %420 = vmatmul.bf16.gmra.mxu0 %v769_v36  ;;  %460 = vmatmul.bf16.gmra.mxu2 %v833_v37  ;;  %v816_v36 = vld [vmem:[%s1409_s0 + $0x70] sm:$0xf]  ;;  %v965_v37 = vld [vmem:[%s1409_s0 + $0x74] sm:$0xf0] }
  0x32   :  { %509 = vmatmul.bf16.gmra.mxu1 %v773_v38  ;;  %549 = vmatmul.bf16.gmra.mxu3 %v837_v39  ;;  %v880_v38 = vld [vmem:[%s1409_s0 + $0xf0] sm:$0xf]  ;;  %v981_v39 = vld [vmem:[%s1409_s0 + $0xf4] sm:$0xf0]  ;;  %v817_v44 = vor.u32 %v965_v37, %v816_v36 }
  0x33   :  { %v881_v45 = vor.u32 %v981_v39, %v880_v38 }
  0x41   :  { %425 = vmatmul.bf16.gmra.mxu0 %v777_v48  ;;  %465 = vmatmul.bf16.gmra.mxu2 %v841_v49  ;;  %v1278_v49 = vld [vmem:[%s1410_s2] ss:$0 sm:$0xff] }
  0x42   :  { %514 = vmatmul.bf16.gmra.mxu1 %v781_v50  ;;  %554 = vmatmul.bf16.gmra.mxu3 %v845_v51 }
  0x51   :  { %430 = vmatmul.bf16.gmra.mxu0 %v785_v60  ;;  %470 = vmatmul.bf16.gmra.mxu2 %v849_v61 }
  0x52   :  { %519 = vmatmul.bf16.gmra.mxu1 %v789_v62  ;;  %559 = vmatmul.bf16.gmra.mxu3 %v853_v63 }
  0x61   :  { %435 = vmatmul.bf16.gmra.mxu0 %v793_v8  ;;  %475 = vmatmul.bf16.gmra.mxu2 %v857_v9 }
  0x62   :  { %524 = vmatmul.bf16.gmra.mxu1 %v797_v10  ;;  %564 = vmatmul.bf16.gmra.mxu3 %v861_v11 }
  0x71   :  { %440 = vmatmul.bf16.gmra.mxu0 %v801_v20  ;;  %480 = vmatmul.bf16.gmra.mxu2 %v865_v21 }
  0x72   :  { %529 = vmatmul.bf16.gmra.mxu1 %v805_v22  ;;  %569 = vmatmul.bf16.gmra.mxu3 %v869_v23 }
  0x81   :  { %445 = vmatmul.bf16.gmra.mxu0 %v809_v32  ;;  %485 = vmatmul.bf16.gmra.mxu2 %v873_v33 }
  0x82   :  { %534 = vmatmul.bf16.gmra.mxu1 %v813_v34  ;;  %574 = vmatmul.bf16.gmra.mxu3 %v877_v35 }
  0x91   :  { %450 = vmatmul.bf16.gmra.mxu0 %v817_v44  ;;  %490 = vmatmul.bf16.gmra.mxu2 %v881_v45 }
  0x92   :  { %539 = vmatmul.bf16.gmra.mxu1 %v821_v46  ;;  %579 = vmatmul.bf16.gmra.mxu3 %v885_v47 }
  0x9e   :  { %v416_v48 = vpop.f32.mrf.mxu0 }
  0x9f   :  { %v505_v50 = vpop.f32.mrf.mxu1 }
  0xa0   :  { %v506_v51 = vadd.f32 %v505_v50, %v416_v48 }
  0xa2   :  { %v688_v52 = vadd.f32 %v1278_v49, %v506_v51 }
  0xa4   :  { %720 = vst [vmem:[%s1411_s3] sm:$0xff] %v688_v52  ;;  %v456_v53 = vpop.f32.mrf.mxu2 }
  0xa5   :  { %v545_v54 = vpop.f32.mrf.mxu3 }
  0xa6   :  { %v546_v55 = vadd.f32 %v545_v54, %v456_v53  ;;  %v418_v56 = vpop.f32.mrf.mxu0 }
  0xa7   :  { %v507_v57 = vpop.f32.mrf.mxu1 }
  0xa8   :  { %v704_v58 = vadd.f32 %v1278_v49, %v546_v55  ;;  %v508_v59 = vadd.f32 %v507_v57, %v418_v56 }
  0xaa   :  { %736 = vst [vmem:[%s1411_s3 + $0x80] sm:$0xff] %v704_v58  ;;  %v689_v60 = vadd.f32 %v1278_v49, %v508_v59 }
  0xac   :  { %721 = vst [vmem:[%s1411_s3 + $0x8] sm:$0xff] %v689_v60  ;;  %v458_v61 = vpop.f32.mrf.mxu2 }
  0xad   :  { %v547_v62 = vpop.f32.mrf.mxu3 }
  0xae   :  { %v548_v63 = vadd.f32 %v547_v62, %v458_v61  ;;  %v421_v0 = vpop.f32.mrf.mxu0 }
  0xaf   :  { %v510_v1 = vpop.f32.mrf.mxu1 }
  0xb0   :  { %v705_v2 = vadd.f32 %v1278_v49, %v548_v63  ;;  %v511_v3 = vadd.f32 %v510_v1, %v421_v0 }
  0xb2   :  { %737 = vst [vmem:[%s1411_s3 + $0x88] sm:$0xff] %v705_v2  ;;  %v690_v4 = vadd.f32 %v1278_v49, %v511_v3 }
  0xb4   :  { %722 = vst [vmem:[%s1411_s3 + $0x10] sm:$0xff] %v690_v4  ;;  %v461_v5 = vpop.f32.mrf.mxu2 }
  0xb5   :  { %v550_v6 = vpop.f32.mrf.mxu3 }
  0xb6   :  { %v551_v7 = vadd.f32 %v550_v6, %v461_v5  ;;  %v423_v8 = vpop.f32.mrf.mxu0 }
  0xb7   :  { %v512_v9 = vpop.f32.mrf.mxu1 }
  0xb8   :  { %v706_v10 = vadd.f32 %v1278_v49, %v551_v7  ;;  %v513_v11 = vadd.f32 %v512_v9, %v423_v8 }
  0xba   :  { %738 = vst [vmem:[%s1411_s3 + $0x90] sm:$0xff] %v706_v10  ;;  %v691_v12 = vadd.f32 %v1278_v49, %v513_v11 }
  0xbc   :  { %723 = vst [vmem:[%s1411_s3 + $0x18] sm:$0xff] %v691_v12  ;;  %v463_v13 = vpop.f32.mrf.mxu2 }
  0xbd   :  { %v552_v14 = vpop.f32.mrf.mxu3 }
  0xbe   :  { %v553_v15 = vadd.f32 %v552_v14, %v463_v13  ;;  %v426_v16 = vpop.f32.mrf.mxu0 }
  0xbf   :  { %v515_v17 = vpop.f32.mrf.mxu1 }
  0xc0   :  { %v707_v18 = vadd.f32 %v1278_v49, %v553_v15  ;;  %v516_v19 = vadd.f32 %v515_v17, %v426_v16 }
  0xc2   :  { %739 = vst [vmem:[%s1411_s3 + $0x98] sm:$0xff] %v707_v18  ;;  %v692_v20 = vadd.f32 %v1278_v49, %v516_v19 }
  0xc4   :  { %724 = vst [vmem:[%s1411_s3 + $0x20] sm:$0xff] %v692_v20  ;;  %v466_v21 = vpop.f32.mrf.mxu2 }
  0xc5   :  { %v555_v22 = vpop.f32.mrf.mxu3 }
  0xc6   :  { %v556_v23 = vadd.f32 %v555_v22, %v466_v21  ;;  %v428_v24 = vpop.f32.mrf.mxu0 }
  0xc7   :  { %v517_v25 = vpop.f32.mrf.mxu1 }
  0xc8   :  { %v708_v26 = vadd.f32 %v1278_v49, %v556_v23  ;;  %v518_v27 = vadd.f32 %v517_v25, %v428_v24 }
  0xca   :  { %740 = vst [vmem:[%s1411_s3 + $0xa0] sm:$0xff] %v708_v26  ;;  %v693_v28 = vadd.f32 %v1278_v49, %v518_v27 }
  0xcc   :  { %725 = vst [vmem:[%s1411_s3 + $0x28] sm:$0xff] %v693_v28  ;;  %v468_v29 = vpop.f32.mrf.mxu2 }
  0xcd   :  { %v557_v30 = vpop.f32.mrf.mxu3 }
  0xce   :  { %v558_v31 = vadd.f32 %v557_v30, %v468_v29  ;;  %v431_v32 = vpop.f32.mrf.mxu0 }
  0xcf   :  { %v520_v33 = vpop.f32.mrf.mxu1 }
  0xd0   :  { %v709_v34 = vadd.f32 %v1278_v49, %v558_v31  ;;  %v521_v35 = vadd.f32 %v520_v33, %v431_v32 }
  0xd2   :  { %741 = vst [vmem:[%s1411_s3 + $0xa8] sm:$0xff] %v709_v34  ;;  %v694_v36 = vadd.f32 %v1278_v49, %v521_v35 }
  0xd4   :  { %726 = vst [vmem:[%s1411_s3 + $0x30] sm:$0xff] %v694_v36  ;;  %v471_v37 = vpop.f32.mrf.mxu2 }
  0xd5   :  { %v560_v38 = vpop.f32.mrf.mxu3 }
  0xd6   :  { %v561_v39 = vadd.f32 %v560_v38, %v471_v37  ;;  %v433_v40 = vpop.f32.mrf.mxu0 }
  0xd7   :  { %v522_v41 = vpop.f32.mrf.mxu1 }
  0xd8   :  { %v710_v42 = vadd.f32 %v1278_v49, %v561_v39  ;;  %v523_v43 = vadd.f32 %v522_v41, %v433_v40 }
  0xda   :  { %742 = vst [vmem:[%s1411_s3 + $0xb0] sm:$0xff] %v710_v42  ;;  %v695_v44 = vadd.f32 %v1278_v49, %v523_v43 }
  0xdc   :  { %727 = vst [vmem:[%s1411_s3 + $0x38] sm:$0xff] %v695_v44  ;;  %v473_v45 = vpop.f32.mrf.mxu2 }
  0xdd   :  { %v562_v46 = vpop.f32.mrf.mxu3 }
  0xde   :  { %v563_v47 = vadd.f32 %v562_v46, %v473_v45  ;;  %v436_v48 = vpop.f32.mrf.mxu0 }
  0xdf   :  { %v525_v50 = vpop.f32.mrf.mxu1 }
  0xe0   :  { %v711_v51 = vadd.f32 %v1278_v49, %v563_v47  ;;  %v526_v52 = vadd.f32 %v525_v50, %v436_v48 }
  0xe2   :  { %743 = vst [vmem:[%s1411_s3 + $0xb8] sm:$0xff] %v711_v51  ;;  %v696_v53 = vadd.f32 %v1278_v49, %v526_v52 }
  0xe4   :  { %728 = vst [vmem:[%s1411_s3 + $0x40] sm:$0xff] %v696_v53  ;;  %v476_v54 = vpop.f32.mrf.mxu2 }
  0xe5   :  { %v565_v55 = vpop.f32.mrf.mxu3 }
  0xe6   :  { %v566_v56 = vadd.f32 %v565_v55, %v476_v54  ;;  %v438_v57 = vpop.f32.mrf.mxu0 }
  0xe7   :  { %v527_v58 = vpop.f32.mrf.mxu1 }
  0xe8   :  { %v712_v59 = vadd.f32 %v1278_v49, %v566_v56  ;;  %v528_v60 = vadd.f32 %v527_v58, %v438_v57 }
  0xea   :  { %744 = vst [vmem:[%s1411_s3 + $0xc0] sm:$0xff] %v712_v59  ;;  %v697_v61 = vadd.f32 %v1278_v49, %v528_v60 }
  0xec   :  { %729 = vst [vmem:[%s1411_s3 + $0x48] sm:$0xff] %v697_v61  ;;  %v478_v62 = vpop.f32.mrf.mxu2 }
  0xed   :  { %v567_v63 = vpop.f32.mrf.mxu3 }
  0xee   :  { %v568_v0 = vadd.f32 %v567_v63, %v478_v62  ;;  %v441_v1 = vpop.f32.mrf.mxu0 }
  0xef   :  { %v530_v2 = vpop.f32.mrf.mxu1 }
  0xf0   :  { %v713_v3 = vadd.f32 %v1278_v49, %v568_v0  ;;  %v531_v4 = vadd.f32 %v530_v2, %v441_v1 }
  0xf2   :  { %745 = vst [vmem:[%s1411_s3 + $0xc8] sm:$0xff] %v713_v3  ;;  %v698_v5 = vadd.f32 %v1278_v49, %v531_v4 }
  0xf4   :  { %730 = vst [vmem:[%s1411_s3 + $0x50] sm:$0xff] %v698_v5  ;;  %v481_v6 = vpop.f32.mrf.mxu2 }
  0xf5   :  { %v570_v7 = vpop.f32.mrf.mxu3 }
  0xf6   :  { %v571_v8 = vadd.f32 %v570_v7, %v481_v6  ;;  %v443_v9 = vpop.f32.mrf.mxu0 }
  0xf7   :  { %v532_v10 = vpop.f32.mrf.mxu1 }
  0xf8   :  { %v714_v11 = vadd.f32 %v1278_v49, %v571_v8  ;;  %v533_v12 = vadd.f32 %v532_v10, %v443_v9 }
  0xfa   :  { %746 = vst [vmem:[%s1411_s3 + $0xd0] sm:$0xff] %v714_v11  ;;  %v699_v13 = vadd.f32 %v1278_v49, %v533_v12 }
  0xfc   :  { %731 = vst [vmem:[%s1411_s3 + $0x58] sm:$0xff] %v699_v13  ;;  %v483_v14 = vpop.f32.mrf.mxu2 }
  0xfd   :  { %v572_v15 = vpop.f32.mrf.mxu3 }
  0xfe   :  { %v573_v16 = vadd.f32 %v572_v15, %v483_v14  ;;  %v446_v17 = vpop.f32.mrf.mxu0 }
  0xff   :  { %v535_v18 = vpop.f32.mrf.mxu1 }
 0x100   :  { %v715_v19 = vadd.f32 %v1278_v49, %v573_v16  ;;  %v536_v20 = vadd.f32 %v535_v18, %v446_v17 }
 0x102   :  { %747 = vst [vmem:[%s1411_s3 + $0xd8] sm:$0xff] %v715_v19  ;;  %v700_v21 = vadd.f32 %v1278_v49, %v536_v20 }
 0x104   :  { %732 = vst [vmem:[%s1411_s3 + $0x60] sm:$0xff] %v700_v21  ;;  %v486_v22 = vpop.f32.mrf.mxu2 }
 0x105   :  { %v575_v23 = vpop.f32.mrf.mxu3 }
 0x106   :  { %v576_v24 = vadd.f32 %v575_v23, %v486_v22  ;;  %v448_v25 = vpop.f32.mrf.mxu0 }
 0x107   :  { %v537_v26 = vpop.f32.mrf.mxu1 }
 0x108   :  { %v716_v27 = vadd.f32 %v1278_v49, %v576_v24  ;;  %v538_v28 = vadd.f32 %v537_v26, %v448_v25 }
 0x10a   :  { %748 = vst [vmem:[%s1411_s3 + $0xe0] sm:$0xff] %v716_v27  ;;  %v701_v29 = vadd.f32 %v1278_v49, %v538_v28 }
 0x10c   :  { %733 = vst [vmem:[%s1411_s3 + $0x68] sm:$0xff] %v701_v29  ;;  %v488_v30 = vpop.f32.mrf.mxu2 }
 0x10d   :  { %v577_v31 = vpop.f32.mrf.mxu3 }
 0x10e   :  { %v578_v32 = vadd.f32 %v577_v31, %v488_v30  ;;  %v451_v33 = vpop.f32.mrf.mxu0 }
 0x10f   :  { %v540_v34 = vpop.f32.mrf.mxu1 }
 0x110   :  { %v717_v35 = vadd.f32 %v1278_v49, %v578_v32  ;;  %v541_v36 = vadd.f32 %v540_v34, %v451_v33 }
 0x112   :  { %749 = vst [vmem:[%s1411_s3 + $0xe8] sm:$0xff] %v717_v35  ;;  %v702_v37 = vadd.f32 %v1278_v49, %v541_v36 }
 0x114   :  { %734 = vst [vmem:[%s1411_s3 + $0x70] sm:$0xff] %v702_v37  ;;  %v491_v38 = vpop.f32.mrf.mxu2 }
 0x115   :  { %v580_v39 = vpop.f32.mrf.mxu3 }
 0x116   :  { %v581_v40 = vadd.f32 %v580_v39, %v491_v38  ;;  %v453_v41 = vpop.f32.mrf.mxu0 }
 0x117   :  { %v542_v42 = vpop.f32.mrf.mxu1 }
 0x118   :  { %v718_v43 = vadd.f32 %v1278_v49, %v581_v40  ;;  %v543_v44 = vadd.f32 %v542_v42, %v453_v41 }
 0x11a   :  { %750 = vst [vmem:[%s1411_s3 + $0xf0] sm:$0xff] %v718_v43  ;;  %v703_v45 = vadd.f32 %v1278_v49, %v543_v44 }
 0x11c   :  { %735 = vst [vmem:[%s1411_s3 + $0x78] sm:$0xff] %v703_v45  ;;  %v493_v46 = vpop.f32.mrf.mxu2 }
 0x11d   :  { %v582_v47 = vpop.f32.mrf.mxu3 }
 0x11e   :  { %v583_v48 = vadd.f32 %v582_v47, %v493_v46 }
 0x120   :  { %v719_v50 = vadd.f32 %v1278_v49, %v583_v48 }
 0x122   :  { %751 = vst [vmem:[%s1411_s3 + $0xf8] sm:$0xff] %v719_v50 }

</bundles_post_ra>
